<compile_context>
chip_gen: v7x
topology: tpu7x:2x2x1
jax: 0.10.0
libtpu: 0.0.40
codegen_flags: <defaults>
</compile_context>

<pallas_src>
import functools
import math

import jax
import jax.numpy as jnp
from jax.experimental import pallas as pl
from jax.experimental.pallas import tpu as pltpu


def _mha_kernel(xq_ref, xk_ref, xv_ref, mask_ref,
                wq_ref, bq_ref, wk_ref, bk_ref, wv_ref, bv_ref, wo_ref, bo_ref,
                o_ref,
                q_scr, m_scr, l_scr, acc_scr,
                *, h, d_k):
    """Grid = (batch, q_tiles, kv_tiles); the kv axis is the innermost reduction axis.

    xq_ref           : (1, tq, D)   bf16   query-activation tile
    xk_ref, xv_ref   : (1, tk, D)   bf16   key/value-activation tiles
    mask_ref         : (1, tq, tk)  int8   1 = attend, 0 = masked
    wq/wk/wv/wo_ref  : (D, D)       bf16   pre-transposed weights (1/sqrt(d_k) folded into wq)
    bq/bk/bv/bo_ref  : (1, D)       f32
    q_scr            : (h, tq, d_k) bf16   projected head-major Q tile (written at kv step 0)
    m_scr, l_scr     : (h, tq, 1)   f32    online-softmax running max / denominator
    acc_scr          : (h, tq, d_k) f32    online-softmax running numerator
    """
    j = pl.program_id(2)
    nk = pl.num_programs(2)
    tq = xq_ref.shape[1]
    tk = xk_ref.shape[1]
    D = xq_ref.shape[2]

    @pl.when(j == 0)
    def _init():
        # Full-width Q projection: one (tq, D) @ (D, D) MXU matmul, f32 accumulation.
        q_full = jnp.dot(xq_ref[0], wq_ref[...],
                         preferred_element_type=jnp.float32) + bq_ref[...]
        # Split heads once per q tile: (tq, D) -> (tq, h, d_k) -> (h, tq, d_k).
        q_scr[...] = jnp.transpose(q_full.reshape(tq, h, d_k), (1, 0, 2)).astype(jnp.bfloat16)
        m_scr[...] = jnp.full(m_scr.shape, -jnp.inf, m_scr.dtype)
        l_scr[...] = jnp.zeros(l_scr.shape, l_scr.dtype)
        acc_scr[...] = jnp.zeros(acc_scr.shape, acc_scr.dtype)

    # Full-width K/V projections for this kv tile: (tk, D) @ (D, D), f32 accumulation.
    k_full = jnp.dot(xk_ref[0], wk_ref[...], preferred_element_type=jnp.float32) + bk_ref[...]
    v_full = jnp.dot(xv_ref[0], wv_ref[...], preferred_element_type=jnp.float32) + bv_ref[...]
    k_h = jnp.transpose(k_full.reshape(tk, h, d_k), (1, 0, 2)).astype(jnp.bfloat16)
    v_h = jnp.transpose(v_full.reshape(tk, h, d_k), (1, 0, 2)).astype(jnp.bfloat16)

    # Head-batched scores (h, tq, tk), bf16 operands with f32 accumulation.
    s = jnp.einsum("hqd,hkd->hqk", q_scr[...], k_h,
                   preferred_element_type=jnp.float32)
    keep = mask_ref[0].astype(jnp.int32)                         # (tq, tk)
    s = jnp.where((keep == 0)[None, :, :], -1000000000.0, s)

    # Online (flash-style) softmax update, in f32.
    m_prev = m_scr[...]
    m_new = jnp.maximum(m_prev, jnp.max(s, axis=-1, keepdims=True))
    alpha = jnp.exp(m_prev - m_new)
    p = jnp.exp(s - m_new)
    l_scr[...] = alpha * l_scr[...] + jnp.sum(p, axis=-1, keepdims=True)
    acc_scr[...] = alpha * acc_scr[...] + jnp.einsum(
        "hqk,hkd->hqd", p.astype(jnp.bfloat16), v_h,
        preferred_element_type=jnp.float32)
    m_scr[...] = m_new
    # TODO(synk): dropout(p_attn) skipped (eval mode).

    @pl.when(j == nk - 1)
    def _finalize():
        # Normalize (approx reciprocal on the EUP), flatten heads, and do ONE full-width
        # output projection -- the head "concat" is a reshape, the head reduction happens
        # inside the MXU contraction (K = h * d_k = D).
        ctx = acc_scr[...] * pl.reciprocal(l_scr[...], approx=True)      # (h, tq, d_k) f32
        ctx_flat = jnp.transpose(ctx, (1, 0, 2)).reshape(tq, D).astype(jnp.bfloat16)
        y = jnp.dot(ctx_flat, wo_ref[...], preferred_element_type=jnp.float32) + bo_ref[...]
        o_ref[0] = y.astype(o_ref.dtype)


def multi_headed_attention(query, key, value, mask, params, *, h, tq=None, tk=None):
    """params: wq/wk/wv/wo are (D, D) PRE-TRANSPOSED (y = x @ W + b); bq/bk/bv/bo are (1, D).

    mask: (B, S, S); 1 = attend, 0 = masked (broadcast over heads, as in the torch module).
    """
    B, S, D = query.shape
    assert D % h == 0
    d_k = D // h
    out_dtype = query.dtype

    # 256-multiples fill the 256-wide MXUs on v6e/v7x and keep per-step VMEM modest on v7x's
    # 64 MiB; collapse to the full (small) sequence when S is tiny.
    tq = min(S, 256) if tq is None else tq
    tk = min(S, 256) if tk is None else tk
    assert S % tq == 0 and S % tk == 0
    # Mosaic layout constraint: block minor dims divisible by (8, 128) or equal to full extent.
    assert tq == S or tq % 8 == 0
    assert tk == S or tk % 128 == 0
    nq, nk = S // tq, S // tk

    inv_sqrt_dk = 1.0 / math.sqrt(d_k)
    # One-time host-side parameter prep: fold 1/sqrt(d_k) into the Q projection and cast the
    # weights to bf16 for the MXU (accumulation stays f32 inside the kernel).
    wq = (params["wq"] * inv_sqrt_dk).astype(jnp.bfloat16)
    bq = (params["bq"] * inv_sqrt_dk).astype(jnp.float32)
    wk = params["wk"].astype(jnp.bfloat16)
    bk = params["bk"].astype(jnp.float32)
    wv = params["wv"].astype(jnp.bfloat16)
    bv = params["bv"].astype(jnp.float32)
    wo = params["wo"].astype(jnp.bfloat16)
    bo = params["bo"].astype(jnp.float32)

    # bf16 activations at the kernel boundary (the kernel feeds bf16 to the MXU anyway) halve
    # the q/k/v DMA bytes; int8 mask is a 4x smaller stream than int32.
    q_bf = query.astype(jnp.bfloat16)
    k_bf = key.astype(jnp.bfloat16)
    v_bf = value.astype(jnp.bfloat16)
    mask_i8 = mask.astype(jnp.int8)

    xq_spec = pl.BlockSpec((1, tq, D), lambda b, i, j: (b, i, 0))
    kv_spec = pl.BlockSpec((1, tk, D), lambda b, i, j: (b, j, 0))
    mask_spec = pl.BlockSpec((1, tq, tk), lambda b, i, j: (b, i, j))
    w_spec = pl.BlockSpec((D, D), lambda b, i, j: (0, 0))     # constant index -> fetched once
    b_spec = pl.BlockSpec((1, D), lambda b, i, j: (0, 0))
    out_spec = pl.BlockSpec((1, tq, D), lambda b, i, j: (b, i, 0))

    kernel = functools.partial(_mha_kernel, h=h, d_k=d_k)

    return pl.pallas_call(
        kernel,
        out_shape=jax.ShapeDtypeStruct((B, S, D), out_dtype),
        grid_spec=pltpu.PrefetchScalarGridSpec(
            num_scalar_prefetch=0,
            grid=(B, nq, nk),
            in_specs=[xq_spec, kv_spec, kv_spec, mask_spec,
                      w_spec, b_spec, w_spec, b_spec, w_spec, b_spec,
                      w_spec, b_spec],
            out_specs=out_spec,
            scratch_shapes=[
                pltpu.VMEM((h, tq, d_k), jnp.bfloat16),   # q_scr
                pltpu.VMEM((h, tq, 1), jnp.float32),      # m_scr
                pltpu.VMEM((h, tq, 1), jnp.float32),      # l_scr
                pltpu.VMEM((h, tq, d_k), jnp.float32),    # acc_scr
            ]),
        compiler_params=pltpu.CompilerParams(
            dimension_semantics=("parallel", "parallel", "arbitrary")),
    )(q_bf, k_bf, v_bf, mask_i8, wq, bq, wk, bk, wv, bv, wo, bo)


def _reference(query, key, value, mask, params, *, h, mxu_dtype=jnp.float32):
    """Pure-JAX reference mirroring the PyTorch module (eval mode).

    mxu_dtype=jnp.bfloat16 reproduces the kernel's matmul-operand precision (accumulation
    stays f32) for a tight numerical comparison; the default f32 is the module semantics.
    """
    B, S, D = query.shape
    d_k = D // h

    def mm(a, b):
        return jnp.einsum("...ij,...jk->...ik", a.astype(mxu_dtype), b.astype(mxu_dtype),
                          preferred_element_type=jnp.float32)

    def lin(x, w, b):
        return mm(x, w) + b[0]

    q = lin(query, params["wq"], params["bq"]).reshape(B, S, h, d_k).transpose(0, 2, 1, 3)
    k = lin(key, params["wk"], params["bk"]).reshape(B, S, h, d_k).transpose(0, 2, 1, 3)
    v = lin(value, params["wv"], params["bv"]).reshape(B, S, h, d_k).transpose(0, 2, 1, 3)

    scores = jnp.einsum("bhqd,bhkd->bhqk", q.astype(mxu_dtype), k.astype(mxu_dtype),
                        preferred_element_type=jnp.float32) / math.sqrt(d_k)
    scores = jnp.where(mask[:, None, :, :] == 0, -1000000000.0, scores)
    p = jax.nn.softmax(scores, axis=-1)
    x = jnp.einsum("bhqk,bhkd->bhqd", p.astype(mxu_dtype), v.astype(mxu_dtype),
                   preferred_element_type=jnp.float32)
    x = x.transpose(0, 2, 1, 3).reshape(B, S, D)
    return lin(x, params["wo"], params["bo"])


if __name__ == "__main__":
    B, S, D, H = 2, 16, 32, 4  # batch, seq, d_model, heads (d_k = 8)

    key0 = jax.random.PRNGKey(0)
    ks = jax.random.split(key0, 12)

    # Deterministic synthetic parameters: 4 x Linear(d_model, d_model), pre-transposed.
    scale = 1.0 / math.sqrt(D)
    params = {
        "wq": jax.random.uniform(ks[0], (D, D), jnp.float32, -scale, scale),
        "bq": jax.random.uniform(ks[1], (1, D), jnp.float32, -scale, scale),
        "wk": jax.random.uniform(ks[2], (D, D), jnp.float32, -scale, scale),
        "bk": jax.random.uniform(ks[3], (1, D), jnp.float32, -scale, scale),
        "wv": jax.random.uniform(ks[4], (D, D), jnp.float32, -scale, scale),
        "bv": jax.random.uniform(ks[5], (1, D), jnp.float32, -scale, scale),
        "wo": jax.random.uniform(ks[6], (D, D), jnp.float32, -scale, scale),
        "bo": jax.random.uniform(ks[7], (1, D), jnp.float32, -scale, scale),
    }

    query = jax.random.normal(ks[8], (B, S, D), jnp.float32)
    key_ = jax.random.normal(ks[9], (B, S, D), jnp.float32)
    value = jax.random.normal(ks[10], (B, S, D), jnp.float32)

    # Causal mask: 1 = attend, 0 = masked (broadcast over heads inside the kernel).
    mask = jnp.tril(jnp.ones((S, S), jnp.int32))[None].repeat(B, axis=0)

    # tq < S exercises the q-tiling / scratch re-init path; tk = S keeps the mask block
    # lane-dim at the full extent (small-S layout constraint).
    out = multi_headed_attention(query, key_, value, mask, params, h=H, tq=8, tk=S)
    out = jax.block_until_ready(out)
    assert out.shape == (B, S, D)

    # Tight check against a reference matching the kernel's bf16 MXU-operand numerics.
    ref_bf16 = _reference(query, key_, value, mask, params, h=H, mxu_dtype=jnp.bfloat16)
    assert jnp.allclose(out, ref_bf16, atol=2.5e-2, rtol=2.5e-2), "mismatch vs bf16-matched reference"

    # Looser check against the pure-f32 module semantics.
    ref_f32 = _reference(query, key_, value, mask, params, h=H)
    assert jnp.allclose(out, ref_f32, atol=5e-2, rtol=5e-2), "mismatch vs f32 reference"

    print("KERNEL_OK")
</pallas_src>

<mosaic_0001>
module attributes {stable_mosaic.version = 11 : i64} {
  func.func @_mha_kernel(%arg0: i32, %arg1: i32, %arg2: i32, %arg3: memref<1x8x32xbf16, #tpu.memory_space<vmem>>, %arg4: memref<1x16x32xbf16, #tpu.memory_space<vmem>>, %arg5: memref<1x16x32xbf16, #tpu.memory_space<vmem>>, %arg6: memref<1x8x16xi8, #tpu.memory_space<vmem>>, %arg7: memref<32x32xbf16, #tpu.memory_space<vmem>>, %arg8: memref<1x32xf32, #tpu.memory_space<vmem>>, %arg9: memref<32x32xbf16, #tpu.memory_space<vmem>>, %arg10: memref<1x32xf32, #tpu.memory_space<vmem>>, %arg11: memref<32x32xbf16, #tpu.memory_space<vmem>>, %arg12: memref<1x32xf32, #tpu.memory_space<vmem>>, %arg13: memref<32x32xbf16, #tpu.memory_space<vmem>>, %arg14: memref<1x32xf32, #tpu.memory_space<vmem>>, %arg15: memref<1x8x32xf32, #tpu.memory_space<vmem>>, %arg16: memref<4x8x8xbf16, #tpu.memory_space<vmem>>, %arg17: memref<4x8x1xf32, #tpu.memory_space<vmem>>, %arg18: memref<4x8x1xf32, #tpu.memory_space<vmem>>, %arg19: memref<4x8x8xf32, #tpu.memory_space<vmem>>) attributes {dimension_semantics = [#tpu.dimension_semantics<parallel>, #tpu.dimension_semantics<parallel>, #tpu.dimension_semantics<arbitrary>], iteration_bounds = array<i64: 2, 2, 1>, scalar_prefetch = 0 : i64, scratch_operands = 4 : i64, tpu.core_type = #tpu.core_type<tc>, window_params = [{transform_indices = @transform_0, window_bounds = array<i64: 1, 8, 32>}, {transform_indices = @transform_1, window_bounds = array<i64: 1, 16, 32>}, {transform_indices = @transform_2, window_bounds = array<i64: 1, 16, 32>}, {transform_indices = @transform_3, window_bounds = array<i64: 1, 8, 16>}, {pipeline_mode = #tpu.pipeline_mode<synchronous>, transform_indices = @transform_4, window_bounds = array<i64: 32, 32>}, {pipeline_mode = #tpu.pipeline_mode<synchronous>, transform_indices = @transform_5, window_bounds = array<i64: 1, 32>}, {pipeline_mode = #tpu.pipeline_mode<synchronous>, transform_indices = @transform_6, window_bounds = array<i64: 32, 32>}, {pipeline_mode = #tpu.pipeline_mode<synchronous>, transform_indices = @transform_7, window_bounds = array<i64: 1, 32>}, {pipeline_mode = #tpu.pipeline_mode<synchronous>, transform_indices = @transform_8, window_bounds = array<i64: 32, 32>}, {pipeline_mode = #tpu.pipeline_mode<synchronous>, transform_indices = @transform_9, window_bounds = array<i64: 1, 32>}, {pipeline_mode = #tpu.pipeline_mode<synchronous>, transform_indices = @transform_10, window_bounds = array<i64: 32, 32>}, {pipeline_mode = #tpu.pipeline_mode<synchronous>, transform_indices = @transform_11, window_bounds = array<i64: 1, 32>}, {transform_indices = @transform_12, window_bounds = array<i64: 1, 8, 32>}]} {
    %c0_i32 = arith.constant 0 : i32
    %0 = arith.cmpi eq, %arg2, %c0_i32 : i32
    %1 = arith.extui %0 : i1 to i32
    %c0_i32_0 = arith.constant 0 : i32
    %2 = arith.cmpi ne, %1, %c0_i32_0 : i32
    scf.if %2 {
      %c0_47 = arith.constant 0 : index
      %c0_48 = arith.constant 0 : index
      %c0_49 = arith.constant 0 : index
      %61 = vector.load %arg3[%c0_47, %c0_48, %c0_49] : memref<1x8x32xbf16, #tpu.memory_space<vmem>>, vector<1x8x32xbf16>
      %62 = vector.shape_cast %61 : vector<1x8x32xbf16> to vector<8x32xbf16>
      %c0_50 = arith.constant 0 : index
      %c0_51 = arith.constant 0 : index
      %63 = vector.load %arg7[%c0_50, %c0_51] : memref<32x32xbf16, #tpu.memory_space<vmem>>, vector<32x32xbf16>
      %cst_52 = arith.constant dense<0.000000e+00> : vector<8x32xf32>
      %64 = tpu.matmul %62, %63, %cst_52 {dimension_numbers = #tpu.dot_dimension_numbers<[1], [0], [0], [1], [0, 0, 1, 1], [], []>} : vector<8x32xbf16>, vector<32x32xbf16>, vector<8x32xf32> -> vector<8x32xf32>
      %c0_53 = arith.constant 0 : index
      %c0_54 = arith.constant 0 : index
      %65 = vector.load %arg8[%c0_53, %c0_54] : memref<1x32xf32, #tpu.memory_space<vmem>>, vector<1x32xf32>
      %66 = vector.broadcast %65 : vector<1x32xf32> to vector<8x32xf32>
      %67 = arith.addf %64, %66 : vector<8x32xf32>
      %68 = vector.shape_cast %67 : vector<8x32xf32> to vector<8x4x8xf32>
      %69 = tpu.transpose %68, [1, 0, 2] : vector<8x4x8xf32> -> vector<4x8x8xf32>
      %70 = arith.truncf %69 : vector<4x8x8xf32> to vector<4x8x8xbf16>
      %c0_55 = arith.constant 0 : index
      %c0_56 = arith.constant 0 : index
      %c0_57 = arith.constant 0 : index
      %71 = vector.load %arg16[%c0_55, %c0_56, %c0_57] : memref<4x8x8xbf16, #tpu.memory_space<vmem>>, vector<4x8x8xbf16>
      tpu.vector_store %arg16[%c0_55, %c0_56, %c0_57], %70 {strides = array<i32>} : memref<4x8x8xbf16, #tpu.memory_space<vmem>>, vector<4x8x8xbf16>,
      %cst_58 = arith.constant 0xFF800000 : f32
      %72 = vector.broadcast %cst_58 : f32 to vector<4x8x1xf32>
      %c0_59 = arith.constant 0 : index
      %c0_60 = arith.constant 0 : index
      %c0_61 = arith.constant 0 : index
      %73 = vector.load %arg17[%c0_59, %c0_60, %c0_61] : memref<4x8x1xf32, #tpu.memory_space<vmem>>, vector<4x8x1xf32>
      tpu.vector_store %arg17[%c0_59, %c0_60, %c0_61], %72 {strides = array<i32>} : memref<4x8x1xf32, #tpu.memory_space<vmem>>, vector<4x8x1xf32>,
      %cst_62 = arith.constant 0.000000e+00 : f32
      %74 = vector.broadcast %cst_62 : f32 to vector<4x8x1xf32>
      %c0_63 = arith.constant 0 : index
      %c0_64 = arith.constant 0 : index
      %c0_65 = arith.constant 0 : index
      %75 = vector.load %arg18[%c0_63, %c0_64, %c0_65] : memref<4x8x1xf32, #tpu.memory_space<vmem>>, vector<4x8x1xf32>
      tpu.vector_store %arg18[%c0_63, %c0_64, %c0_65], %74 {strides = array<i32>} : memref<4x8x1xf32, #tpu.memory_space<vmem>>, vector<4x8x1xf32>,
      %cst_66 = arith.constant 0.000000e+00 : f32
      %76 = vector.broadcast %cst_66 : f32 to vector<4x8x8xf32>
      %c0_67 = arith.constant 0 : index
      %c0_68 = arith.constant 0 : index
      %c0_69 = arith.constant 0 : index
      %77 = vector.load %arg19[%c0_67, %c0_68, %c0_69] : memref<4x8x8xf32, #tpu.memory_space<vmem>>, vector<4x8x8xf32>
      tpu.vector_store %arg19[%c0_67, %c0_68, %c0_69], %76 {strides = array<i32>} : memref<4x8x8xf32, #tpu.memory_space<vmem>>, vector<4x8x8xf32>,
    } else {
    }
    %c0 = arith.constant 0 : index
    %c0_1 = arith.constant 0 : index
    %c0_2 = arith.constant 0 : index
    %3 = vector.load %arg4[%c0, %c0_1, %c0_2] : memref<1x16x32xbf16, #tpu.memory_space<vmem>>, vector<1x16x32xbf16>
    %4 = vector.shape_cast %3 : vector<1x16x32xbf16> to vector<16x32xbf16>
    %c0_3 = arith.constant 0 : index
    %c0_4 = arith.constant 0 : index
    %5 = vector.load %arg9[%c0_3, %c0_4] : memref<32x32xbf16, #tpu.memory_space<vmem>>, vector<32x32xbf16>
    %cst = arith.constant dense<0.000000e+00> : vector<16x32xf32>
    %6 = tpu.matmul %4, %5, %cst {dimension_numbers = #tpu.dot_dimension_numbers<[1], [0], [0], [1], [0, 0, 1, 1], [], []>} : vector<16x32xbf16>, vector<32x32xbf16>, vector<16x32xf32> -> vector<16x32xf32>
    %c0_5 = arith.constant 0 : index
    %c0_6 = arith.constant 0 : index
    %7 = vector.load %arg10[%c0_5, %c0_6] : memref<1x32xf32, #tpu.memory_space<vmem>>, vector<1x32xf32>
    %8 = vector.broadcast %7 : vector<1x32xf32> to vector<16x32xf32>
    %9 = arith.addf %6, %8 : vector<16x32xf32>
    %c0_7 = arith.constant 0 : index
    %c0_8 = arith.constant 0 : index
    %c0_9 = arith.constant 0 : index
    %10 = vector.load %arg5[%c0_7, %c0_8, %c0_9] : memref<1x16x32xbf16, #tpu.memory_space<vmem>>, vector<1x16x32xbf16>
    %11 = vector.shape_cast %10 : vector<1x16x32xbf16> to vector<16x32xbf16>
    %c0_10 = arith.constant 0 : index
    %c0_11 = arith.constant 0 : index
    %12 = vector.load %arg11[%c0_10, %c0_11] : memref<32x32xbf16, #tpu.memory_space<vmem>>, vector<32x32xbf16>
    %cst_12 = arith.constant dense<0.000000e+00> : vector<16x32xf32>
    %13 = tpu.matmul %11, %12, %cst_12 {dimension_numbers = #tpu.dot_dimension_numbers<[1], [0], [0], [1], [0, 0, 1, 1], [], []>} : vector<16x32xbf16>, vector<32x32xbf16>, vector<16x32xf32> -> vector<16x32xf32>
    %c0_13 = arith.constant 0 : index
    %c0_14 = arith.constant 0 : index
    %14 = vector.load %arg12[%c0_13, %c0_14] : memref<1x32xf32, #tpu.memory_space<vmem>>, vector<1x32xf32>
    %15 = vector.broadcast %14 : vector<1x32xf32> to vector<16x32xf32>
    %16 = arith.addf %13, %15 : vector<16x32xf32>
    %17 = vector.shape_cast %9 : vector<16x32xf32> to vector<16x4x8xf32>
    %18 = tpu.transpose %17, [1, 0, 2] : vector<16x4x8xf32> -> vector<4x16x8xf32>
    %19 = arith.truncf %18 : vector<4x16x8xf32> to vector<4x16x8xbf16>
    %20 = vector.shape_cast %16 : vector<16x32xf32> to vector<16x4x8xf32>
    %21 = tpu.transpose %20, [1, 0, 2] : vector<16x4x8xf32> -> vector<4x16x8xf32>
    %22 = arith.truncf %21 : vector<4x16x8xf32> to vector<4x16x8xbf16>
    %c0_15 = arith.constant 0 : index
    %c0_16 = arith.constant 0 : index
    %c0_17 = arith.constant 0 : index
    %23 = vector.load %arg16[%c0_15, %c0_16, %c0_17] : memref<4x8x8xbf16, #tpu.memory_space<vmem>>, vector<4x8x8xbf16>
    "tpu.trace_start"() <{level = 10 : i32, message = "hqd,hkd->hqk"}> : () -> ()
    %cst_18 = arith.constant dense<0.000000e+00> : vector<4x8x16xf32>
    %24 = tpu.matmul %23, %19, %cst_18 {dimension_numbers = #tpu.dot_dimension_numbers<[2], [2], [1], [1], [0, 0, 0, 1, 1, 1], [0], [0]>} : vector<4x8x8xbf16>, vector<4x16x8xbf16>, vector<4x8x16xf32> -> vector<4x8x16xf32>
    "tpu.trace_stop"() : () -> ()
    %c0_19 = arith.constant 0 : index
    %c0_20 = arith.constant 0 : index
    %c0_21 = arith.constant 0 : index
    %25 = vector.load %arg6[%c0_19, %c0_20, %c0_21] : memref<1x8x16xi8, #tpu.memory_space<vmem>>, vector<1x8x16xi8>
    %26 = vector.shape_cast %25 : vector<1x8x16xi8> to vector<8x16xi8>
    %27 = arith.extsi %26 : vector<8x16xi8> to vector<8x16xi32>
    %c0_i32_22 = arith.constant 0 : i32
    %28 = vector.broadcast %c0_i32_22 : i32 to vector<8x16xi32>
    %29 = arith.cmpi eq, %27, %28 : vector<8x16xi32>
    %30 = vector.shape_cast %29 : vector<8x16xi1> to vector<1x8x16xi1>
    %cst_23 = arith.constant -1.000000e+09 : f32
    %31 = vector.shape_cast %30 : vector<1x8x16xi1> to vector<1x8x16xi1>
    %32 = vector.broadcast %31 : vector<1x8x16xi1> to vector<4x8x16xi1>
    %33 = vector.broadcast %cst_23 : f32 to vector<4x8x16xf32>
    %34 = arith.select %32, %33, %24 : vector<4x8x16xi1>, vector<4x8x16xf32>
    %c0_24 = arith.constant 0 : index
    %c0_25 = arith.constant 0 : index
    %c0_26 = arith.constant 0 : index
    %35 = vector.load %arg17[%c0_24, %c0_25, %c0_26] : memref<4x8x1xf32, #tpu.memory_space<vmem>>, vector<4x8x1xf32>
    %cst_27 = arith.constant dense<0xFF800000> : vector<4x8xf32>
    %36 = vector.multi_reduction <maximumf>, %34, %cst_27 [2] : vector<4x8x16xf32> to vector<4x8xf32>
    %37 = vector.shape_cast %36 : vector<4x8xf32> to vector<4x8x1xf32>
    %38 = arith.maximumf %35, %37 : vector<4x8x1xf32>
    %39 = arith.subf %35, %38 : vector<4x8x1xf32>
    %40 = math.exp %39 : vector<4x8x1xf32>
    %41 = vector.broadcast %38 : vector<4x8x1xf32> to vector<4x8x16xf32>
    %42 = arith.subf %34, %41 : vector<4x8x16xf32>
    %43 = math.exp %42 : vector<4x8x16xf32>
    %c0_28 = arith.constant 0 : index
    %c0_29 = arith.constant 0 : index
    %c0_30 = arith.constant 0 : index
    %44 = vector.load %arg18[%c0_28, %c0_29, %c0_30] : memref<4x8x1xf32, #tpu.memory_space<vmem>>, vector<4x8x1xf32>
    %45 = arith.mulf %40, %44 : vector<4x8x1xf32>
    %cst_31 = arith.constant dense<0.000000e+00> : vector<4x8xf32>
    %46 = vector.multi_reduction <add>, %43, %cst_31 [2] : vector<4x8x16xf32> to vector<4x8xf32>
    %47 = vector.shape_cast %46 : vector<4x8xf32> to vector<4x8x1xf32>
    %48 = arith.addf %45, %47 : vector<4x8x1xf32>
    %c0_32 = arith.constant 0 : index
    %c0_33 = arith.constant 0 : index
    %c0_34 = arith.constant 0 : index
    %49 = vector.load %arg18[%c0_32, %c0_33, %c0_34] : memref<4x8x1xf32, #tpu.memory_space<vmem>>, vector<4x8x1xf32>
    tpu.vector_store %arg18[%c0_32, %c0_33, %c0_34], %48 {strides = array<i32>} : memref<4x8x1xf32, #tpu.memory_space<vmem>>, vector<4x8x1xf32>,
    %c0_35 = arith.constant 0 : index
    %c0_36 = arith.constant 0 : index
    %c0_37 = arith.constant 0 : index
    %50 = vector.load %arg19[%c0_35, %c0_36, %c0_37] : memref<4x8x8xf32, #tpu.memory_space<vmem>>, vector<4x8x8xf32>
    %51 = vector.broadcast %40 : vector<4x8x1xf32> to vector<4x8x8xf32>
    %52 = arith.mulf %51, %50 : vector<4x8x8xf32>
    %53 = arith.truncf %43 : vector<4x8x16xf32> to vector<4x8x16xbf16>
    "tpu.trace_start"() <{level = 10 : i32, message = "hqk,hkd->hqd"}> : () -> ()
    %cst_38 = arith.constant dense<0.000000e+00> : vector<4x8x8xf32>
    %54 = tpu.matmul %53, %22, %cst_38 {dimension_numbers = #tpu.dot_dimension_numbers<[2], [1], [1], [2], [0, 0, 0, 1, 1, 2], [0], [0]>} : vector<4x8x16xbf16>, vector<4x16x8xbf16>, vector<4x8x8xf32> -> vector<4x8x8xf32>
    "tpu.trace_stop"() : () -> ()
    %55 = arith.addf %52, %54 : vector<4x8x8xf32>
    %c0_39 = arith.constant 0 : index
    %c0_40 = arith.constant 0 : index
    %c0_41 = arith.constant 0 : index
    %56 = vector.load %arg19[%c0_39, %c0_40, %c0_41] : memref<4x8x8xf32, #tpu.memory_space<vmem>>, vector<4x8x8xf32>
    tpu.vector_store %arg19[%c0_39, %c0_40, %c0_41], %55 {strides = array<i32>} : memref<4x8x8xf32, #tpu.memory_space<vmem>>, vector<4x8x8xf32>,
    %c0_42 = arith.constant 0 : index
    %c0_43 = arith.constant 0 : index
    %c0_44 = arith.constant 0 : index
    %57 = vector.load %arg17[%c0_42, %c0_43, %c0_44] : memref<4x8x1xf32, #tpu.memory_space<vmem>>, vector<4x8x1xf32>
    tpu.vector_store %arg17[%c0_42, %c0_43, %c0_44], %38 {strides = array<i32>} : memref<4x8x1xf32, #tpu.memory_space<vmem>>, vector<4x8x1xf32>,
    %c0_i32_45 = arith.constant 0 : i32
    %58 = arith.cmpi eq, %arg2, %c0_i32_45 : i32
    %59 = arith.extui %58 : i1 to i32
    %c0_i32_46 = arith.constant 0 : i32
    %60 = arith.cmpi ne, %59, %c0_i32_46 : i32
    scf.if %60 {
      %c0_47 = arith.constant 0 : index
      %c0_48 = arith.constant 0 : index
      %c0_49 = arith.constant 0 : index
      %61 = vector.load %arg19[%c0_47, %c0_48, %c0_49] : memref<4x8x8xf32, #tpu.memory_space<vmem>>, vector<4x8x8xf32>
      %c0_50 = arith.constant 0 : index
      %c0_51 = arith.constant 0 : index
      %c0_52 = arith.constant 0 : index
      %62 = vector.load %arg18[%c0_50, %c0_51, %c0_52] : memref<4x8x1xf32, #tpu.memory_space<vmem>>, vector<4x8x1xf32>
      %63 = tpu.reciprocal %62 {approx = true} : vector<4x8x1xf32> -> vector<4x8x1xf32>
      %64 = vector.broadcast %63 : vector<4x8x1xf32> to vector<4x8x8xf32>
      %65 = arith.mulf %61, %64 : vector<4x8x8xf32>
      %66 = tpu.transpose %65, [1, 0, 2] : vector<4x8x8xf32> -> vector<8x4x8xf32>
      %67 = vector.shape_cast %66 : vector<8x4x8xf32> to vector<8x32xf32>
      %68 = arith.truncf %67 : vector<8x32xf32> to vector<8x32xbf16>
      %c0_53 = arith.constant 0 : index
      %c0_54 = arith.constant 0 : index
      %69 = vector.load %arg13[%c0_53, %c0_54] : memref<32x32xbf16, #tpu.memory_space<vmem>>, vector<32x32xbf16>
      %cst_55 = arith.constant dense<0.000000e+00> : vector<8x32xf32>
      %70 = tpu.matmul %68, %69, %cst_55 {dimension_numbers = #tpu.dot_dimension_numbers<[1], [0], [0], [1], [0, 0, 1, 1], [], []>} : vector<8x32xbf16>, vector<32x32xbf16>, vector<8x32xf32> -> vector<8x32xf32>
      %c0_56 = arith.constant 0 : index
      %c0_57 = arith.constant 0 : index
      %71 = vector.load %arg14[%c0_56, %c0_57] : memref<1x32xf32, #tpu.memory_space<vmem>>, vector<1x32xf32>
      %72 = vector.broadcast %71 : vector<1x32xf32> to vector<8x32xf32>
      %73 = arith.addf %70, %72 : vector<8x32xf32>
      %c0_58 = arith.constant 0 : index
      %c0_59 = arith.constant 0 : index
      %c0_60 = arith.constant 0 : index
      %74 = vector.load %arg15[%c0_58, %c0_59, %c0_60] : memref<1x8x32xf32, #tpu.memory_space<vmem>>, vector<1x8x32xf32>
      %75 = vector.shape_cast %74 : vector<1x8x32xf32> to vector<8x32xf32>
      %76 = vector.shape_cast %73 : vector<8x32xf32> to vector<1x8x32xf32>
      tpu.vector_store %arg15[%c0_58, %c0_59, %c0_60], %76 {strides = array<i32>} : memref<1x8x32xf32, #tpu.memory_space<vmem>>, vector<1x8x32xf32>,
    } else {
    }
    return
  }
  func.func @transform_0(%arg0: i32, %arg1: i32, %arg2: i32) -> (i32, i32, i32) {
    %c0_i32 = arith.constant 0 : i32
    %c0_i32_0 = arith.constant 0 : i32
    return %arg0, %arg1, %c0_i32 : i32, i32, i32
  }
  func.func @transform_1(%arg0: i32, %arg1: i32, %arg2: i32) -> (i32, i32, i32) {
    %c0_i32 = arith.constant 0 : i32
    %c0_i32_0 = arith.constant 0 : i32
    return %arg0, %arg2, %c0_i32 : i32, i32, i32
  }
  func.func @transform_2(%arg0: i32, %arg1: i32, %arg2: i32) -> (i32, i32, i32) {
    %c0_i32 = arith.constant 0 : i32
    %c0_i32_0 = arith.constant 0 : i32
    return %arg0, %arg2, %c0_i32 : i32, i32, i32
  }
  func.func @transform_3(%arg0: i32, %arg1: i32, %arg2: i32) -> (i32, i32, i32) {
    %c0_i32 = arith.constant 0 : i32
    return %arg0, %arg1, %arg2 : i32, i32, i32
  }
  func.func @transform_4(%arg0: i32, %arg1: i32, %arg2: i32) -> (i32, i32) {
    %c0_i32 = arith.constant 0 : i32
    %c0_i32_0 = arith.constant 0 : i32
    %c0_i32_1 = arith.constant 0 : i32
    return %c0_i32, %c0_i32_0 : i32, i32
  }
  func.func @transform_5(%arg0: i32, %arg1: i32, %arg2: i32) -> (i32, i32) {
    %c0_i32 = arith.constant 0 : i32
    %c0_i32_0 = arith.constant 0 : i32
    %c0_i32_1 = arith.constant 0 : i32
    return %c0_i32, %c0_i32_0 : i32, i32
  }
  func.func @transform_6(%arg0: i32, %arg1: i32, %arg2: i32) -> (i32, i32) {
    %c0_i32 = arith.constant 0 : i32
    %c0_i32_0 = arith.constant 0 : i32
    %c0_i32_1 = arith.constant 0 : i32
    return %c0_i32, %c0_i32_0 : i32, i32
  }
  func.func @transform_7(%arg0: i32, %arg1: i32, %arg2: i32) -> (i32, i32) {
    %c0_i32 = arith.constant 0 : i32
    %c0_i32_0 = arith.constant 0 : i32
    %c0_i32_1 = arith.constant 0 : i32
    return %c0_i32, %c0_i32_0 : i32, i32
  }
  func.func @transform_8(%arg0: i32, %arg1: i32, %arg2: i32) -> (i32, i32) {
    %c0_i32 = arith.constant 0 : i32
    %c0_i32_0 = arith.constant 0 : i32
    %c0_i32_1 = arith.constant 0 : i32
    return %c0_i32, %c0_i32_0 : i32, i32
  }
  func.func @transform_9(%arg0: i32, %arg1: i32, %arg2: i32) -> (i32, i32) {
    %c0_i32 = arith.constant 0 : i32
    %c0_i32_0 = arith.constant 0 : i32
    %c0_i32_1 = arith.constant 0 : i32
    return %c0_i32, %c0_i32_0 : i32, i32
  }
  func.func @transform_10(%arg0: i32, %arg1: i32, %arg2: i32) -> (i32, i32) {
    %c0_i32 = arith.constant 0 : i32
    %c0_i32_0 = arith.constant 0 : i32
    %c0_i32_1 = arith.constant 0 : i32
    return %c0_i32, %c0_i32_0 : i32, i32
  }
  func.func @transform_11(%arg0: i32, %arg1: i32, %arg2: i32) -> (i32, i32) {
    %c0_i32 = arith.constant 0 : i32
    %c0_i32_0 = arith.constant 0 : i32
    %c0_i32_1 = arith.constant 0 : i32
    return %c0_i32, %c0_i32_0 : i32, i32
  }
  func.func @transform_12(%arg0: i32, %arg1: i32, %arg2: i32) -> (i32, i32, i32) {
    %c0_i32 = arith.constant 0 : i32
    %c0_i32_0 = arith.constant 0 : i32
    return %arg0, %arg1, %c0_i32 : i32, i32, i32
  }
}

</mosaic_0001>

<bundles_post_ra>
// kernel: tpu_custom_call.1
= control target key start
LH: loop header
LB: loop body
LE: loop exit
PB: predicated region body
PF: predicated region fallthrough
CT: control target
= control target key end

     0   :  { %s4215_s0 = inlined_call_operand.hbm [shape: bf16[2,16,32], index: 0, kind: input, shape index: {}]   ;;  %s4216_s1 = inlined_call_operand.hbm [shape: bf16[2,16,32], index: 1, kind: input, shape index: {}]   ;;  %s4217_s2 = inlined_call_operand.hbm [shape: bf16[2,16,32], index: 2, kind: input, shape index: {}]   ;;  %s4218_s3 = inlined_call_operand.hbm [shape: s8[2,16,16], index: 3, kind: input, shape index: {}]   ;;  %s4219_s4 = inlined_call_operand.hbm [shape: bf16[32,32], index: 4, kind: input, shape index: {}]   ;;  %s4220_s5 = inlined_call_operand.vmem [shape: f32[1,32], index: 5, kind: input, shape index: {}]   ;;  %s4221_s6 = inlined_call_operand.vmem [shape: bf16[32,32], index: 6, kind: input, shape index: {}]   ;;  %s4222_s7 = inlined_call_operand.vmem [shape: f32[1,32], index: 7, kind: input, shape index: {}]   ;;  %s4223_s8 = inlined_call_operand.hbm [shape: bf16[32,32], index: 8, kind: input, shape index: {}]   ;;  %s4224_s9 = inlined_call_operand.hbm [shape: f32[1,32], index: 9, kind: input, shape index: {}]   ;;  %s4225_s10 = inlined_call_operand.vmem [shape: bf16[32,32], index: 10, kind: input, shape index: {}]   ;;  %s4226_s11 = inlined_call_operand.vmem [shape: f32[1,32], index: 11, kind: input, shape index: {}]   ;;  %s4227_s12 = inlined_call_operand.hbm [shape: f32[2,16,32], index: 12, kind: output, shape index: {}]  }
   0x1   :  { %4262 = sst [smem:[#allocation37_spill]] %s4215_s0 }
   0x2   :  { %4263 = sst [smem:[#allocation38_spill]] %s4216_s1 }
   0x3   :  { %4264 = sst [smem:[#allocation39_spill]] %s4218_s3 }
   0x4   :  { %4265 = sst [smem:[#allocation40_spill]] %s4219_s4 }
   0x5   :  { %4266 = sst [smem:[#allocation41_spill]] %s4220_s5 }
   0x6   :  { %4267 = sst [smem:[#allocation42_spill]] %s4221_s6 }
   0x7   :  { %4268 = sst [smem:[#allocation43_spill]] %s4222_s7 }
   0x8   :  { %4269 = sst [smem:[#allocation44_spill]] %s4223_s8 }
   0x9   :  { %4270 = sst [smem:[#allocation45_spill]] %s4224_s9 }
   0xa   :  { %4271 = sst [smem:[#allocation46_spill]] %s4225_s10 }
   0xb   :  { %4272 = sst [smem:[#allocation47_spill]] %s4226_s11 }
   0xc   :  { %4273 = sst [smem:[#allocation48_spill]] %s4227_s12 }
   0xd   :  { %17 = vsyncpa [#allocation7], 0 }
   0xe   :  { %19 = vsyncpa [#allocation7 + $0x1], 0 }
   0xf   :  { %20 = vsyncpa [#allocation10], 0 }
  0x10   :  { %22 = vsyncpa [#allocation10 + $0x1], 0 }
  0x11   :  { %23 = vsyncpa [#allocation13], 0 }
  0x12   :  { %25 = vsyncpa [#allocation13 + $0x1], 0 }
  0x13   :  { %26 = vsyncpa [#allocation16], 0 }
  0x14   :  { %27 = vsyncpa [#allocation8], 0 }
  0x15   :  { %29 = vsyncpa [#allocation8 + $0x1], 0  ;;  %s3393_s21 = smov 0   ;;  %s3395_s22 = smov 0  }
  0x16   :  { %s3397_s23 = smov 0   ;;  %s3399_s24 = smov 0  }
  0x17   :  { %s3401_s25 = smov 0   ;;  %s3403_s26 = smov 0  }
  0x18   :  { %s3405_s27 = smov 0   ;;  %s3407_s28 = smov 0  }
  0x19   :  { %s3409_s29 = smov 0   ;;  %s3411_s30 = smov 0  }
  0x1a   :  { %s3413_s13 = smov 0  }
  0x1b LB: > { %4274 = sst [smem:[#allocation25_spill]] %s3268_s22  ;;  %s3447_s14 = sadd.s32 4294967295, %s3304_s13   ;;  %s3304_s13 = sphi %s3413_s13, %s35_s13   ;;  %s3300_s30 = sphi %s3411_s30, %s4352_s30   ;;  %s3296_s29 = sphi %s3409_s29, %s4351_s29   ;;  %s3292_s28 = sphi %s3407_s28, %s4350_s28   ;;  %s3288_s27 = sphi %s3405_s27, %s4349_s27   ;;  %s3284_s26 = sphi %s3403_s26, %s4348_s26   ;;  %s3280_s25 = sphi %s3401_s25, %s4347_s25   ;;  %s3276_s24 = sphi %s3399_s24, %s4346_s24   ;;  %s3272_s23 = sphi %s3397_s23, %s4345_s23   ;;  %s3268_s22 = sphi %s3395_s22, %s4344_s22   ;;  %s3264_s21 = sphi %s3393_s21, %s4341_s21  }
  0x1c   : > { %4275 = sst [smem:[#allocation26_spill]] %s3276_s24  ;;  %p104_p0 = scmp.ne.s32.totalorder %s3268_s22, %s3264_s21 }
  0x1d   : > { %4276 = sst [smem:[#allocation27_spill]] %s3288_s27  ;;  %p4230_p1 = scmp.eq.s32.totalorder %s3447_s14, 0 }
  0x1e   : > { %4277 = sst [smem:[#allocation28_spill]] %s3292_s28  ;;  %p2585_p2 = scmp.ge.s32.totalorder %s3304_s13, 1 }
  0x1f   : > { %4278 = sst [smem:[#allocation29_spill]] %s3447_s14  ;;  %p369_p3 = scmp.lt.s32.totalorder %s3304_s13, 5 }
  0x20   : > { %p3455_p4 = por %p104_p0, %p4230_p1  ;;  %s3306_s17 = smov [#allocation14]  }
  0x21   : > { %p3459_p5 = pnand %p2585_p2, %p369_p3  ;;  %s381_s18 = sshll.u32 %s3306_s17, 4  ;;  %s382_s18 = int_to_ptr.vmem [resolvable:$true] %s381_s18 }
  0x22   : > { %s4279_s15 = scalar_select %p3455_p4, 1, 0 }
  0x23   : > { %s4281_s16 = scalar_select %p3459_p5, 1, 0 }
  0x24   : > { %4280 = sst [smem:[#allocation30_spill]] %s4279_s15  ;;  %p2786_p6 = pneg %p3459_p5 }
  0x25   : > { %4282 = sst [smem:[#allocation31_spill]] %s4281_s16  ;;  %s3307_s20 = smov [#allocation15]  }
  0x26   : > { %p3467_p7 = pnand %p2786_p6, %p4230_p1  ;;  %s403_s21 = sshll.u32 %s3307_s20, 4  ;;  %s3471_s21 = int_to_ptr.vmem [resolvable:$true] %s403_s21 }
  0x27   : > { %s4284_s4 = sld [smem:[#allocation40_spill]] }
  0x28   : > { %s4283_s19 = scalar_select %p3467_p7, 1, 0 }
  0x29   : > { %p3481_p9 = pneg %p3467_p7 }
  0x2d   : > { %s2962_s27 = scalar_lea.hbm %s4284_s4, 256 }
  0x2e   : > { %p2963_p8 = scmp.ne.s32.totalorder %s4284_s4, %s2962_s27  ;;  %p2969_p12 = scmp.lt.u32.totalorder %s2962_s27, %s4284_s4 }
  0x30   : > { %p2965_p10 = pnand %p3481_p9, %p2963_p8 }
  0x32   : > { %p2966_p11 = pneg %p2965_p10 }
  0x34   : > { %p2971_p13 = pnand %p2969_p12, %p2966_p11 }
  0x36   : > { %2974 = shalt.err (!%p2971_p13)
}
  0x37   : > { %s2975_s11 = scalar_lea.vmem %s382_s18, 256  ;;  %p2983_p6 = scmp.lt.s32.totalorder %s382_s18, %s382_s18 }
  0x38   : > { %p2976_p0 = scmp.ne.s32.totalorder %s382_s18, %s2975_s11  ;;  %p2984_p1 = scmp.lt.s32.totalorder %s2975_s11, %s2975_s11 }
  0x3a   : > { %p2978_p2 = pnand %p2976_p0, %p3481_p9  ;;  %p2985_p4 = por %p2984_p1, %p2983_p6 }
  0x3c   : > { %p2979_p3 = pneg %p2978_p2 }
  0x3e   : > { %p2986_p5 = pnand %p2985_p4, %p2979_p3 }
  0x40   : > { %2989 = shalt.err (!%p2986_p5)
}
  0x41   : > { %s4238_s10 = smov 64   ;;  %s4240_s12 = smov 4  }
  0x42   : > { %2789 = dma.hbm_to_vmem [thread:$0]  (!%p3467_p7), %s4284_s4, 256, %s382_s18, [#allocation13], %s4238_s10, %s4238_s10, %s4240_s12  }
  0x43   : > { %s4286_s8 = sld [smem:[#allocation44_spill]] }
  0x49   : > { %s2990_s5 = scalar_lea.hbm %s4286_s8, 256 }
  0x4a   : > { %p2991_p1 = scmp.ne.s32.totalorder %s4286_s8, %s2990_s5  ;;  %p2997_p8 = scmp.lt.u32.totalorder %s2990_s5, %s4286_s8 }
  0x4c   : > { %p2993_p4 = pnand %p2991_p1, %p3481_p9 }
  0x4e   : > { %p2994_p5 = pneg %p2993_p4 }
  0x50   : > { %p2999_p10 = pnand %p2997_p8, %p2994_p5 }
  0x52   : > { %3002 = shalt.err (!%p2999_p10)
}
  0x53   : > { %s3003_s18 = scalar_lea.vmem %s3471_s21, 256  ;;  %p3011_p0 = scmp.lt.s32.totalorder %s3471_s21, %s3471_s21 }
  0x54   : > { %p3004_p11 = scmp.ne.s32.totalorder %s3471_s21, %s3003_s18  ;;  %p3012_p2 = scmp.lt.s32.totalorder %s3003_s18, %s3003_s18 }
  0x56   : > { %p3006_p12 = pnand %p3004_p11, %p3481_p9  ;;  %p3013_p3 = por %p3012_p2, %p3011_p0 }
  0x58   : > { %p3007_p13 = pneg %p3006_p12 }
  0x5a   : > { %p3014_p6 = pnand %p3013_p3, %p3007_p13 }
  0x5c   : > { %3017 = shalt.err (!%p3014_p6)
}
  0x5d   : > { %2792 = dma.hbm_to_vmem [thread:$0]  (!%p3467_p7), %s4286_s8, 256, %s3471_s21, [#allocation16], %s4238_s10, %s4238_s10, %s4240_s12  }
  0x5e   : > { %p4244_p1 = scmp.eq.s32.totalorder %s3304_s13, 0  ;;  %p98_p4 = scmp.ne.s32.totalorder %s3272_s23, %s3268_s22 }
  0x5f   : > { %p4242_p5 = scmp.lt.s32.totalorder %s3304_s13, 4  ;;  %s4243_s15 = sand.u32 1, %s3304_s13  }
  0x60   : > { %s456_s16 = sand.u32 1, %s3272_s23   ;;  %p100_p8 = por %p98_p4, %p4244_p1 }
  0x61   : > { %s3534_s7 = sshll.u32 %s456_s16, 3  ;;  %s4237_s27 = sshll.u32 %s3300_s30, 7 }
  0x62   : > { %s4287_s1 = sld [smem:[#allocation38_spill]]  ;;  %s458_s21 = scalar_lea.vmem [#allocation9], %s3534_s7 }
  0x63   : > { %s467_s18 = sshll.u32 %s458_s21, 4  ;;  %p3547_p10 = pnand %p4242_p5, %p100_p8  ;;  %s3552_s18 = int_to_ptr.vmem [resolvable:$true] %s467_s18 }
  0x64   : > { %s3556_s16 = scalar_lea.sflag [#allocation10], %s4243_s15 }
  0x65   : > { %s4288_s5 = scalar_select %p3547_p10, 1, 0 }
  0x66   : > { %p4251_p12 = pneg %p3547_p10 }
  0x67   : > { %4289 = sst [smem:[#allocation32_spill]] %s4288_s5 }
  0x68   : > { %s3542_s11 = scalar_lea.hbm %s4287_s1, %s4237_s27  ;;  %s3023_s27 = scalar_lea.hbm %s4287_s1, 256 }
  0x69   : > { %s3018_s28 = scalar_lea.hbm %s3542_s11, 128  ;;  %p3024_p2 = scmp.lt.u32.totalorder %s3542_s11, %s4287_s1 }
  0x6a   : > { %p3019_p11 = scmp.ne.s32.totalorder %s3542_s11, %s3018_s28  ;;  %p3025_p3 = scmp.lt.u32.totalorder %s3023_s27, %s3018_s28 }
  0x6b   : > { %p3027_p4 = scmp.lt.u32.totalorder %s3018_s28, %s3542_s11 }
  0x6c   : > { %p3021_p13 = pnand %p4251_p12, %p3019_p11  ;;  %p3026_p6 = por %p3025_p3, %p3024_p2 }
  0x6e   : > { %p3022_p0 = pneg %p3021_p13  ;;  %p3028_p8 = por %p3027_p4, %p3026_p6 }
  0x70   : > { %p3029_p5 = pnand %p3028_p8, %p3022_p0 }
  0x72   : > { %3032 = shalt.err (!%p3029_p5)
}
  0x73   : > { %s3033_s15 = scalar_lea.vmem %s3552_s18, 128  ;;  %s3310_s20 = smov [#allocation9]  }
  0x74   : > { %p3034_p11 = scmp.ne.s32.totalorder %s3552_s18, %s3033_s15  ;;  %s3038_s21 = sshll.u32 %s3310_s20, 4  ;;  %s3039_s21 = int_to_ptr.vmem [resolvable:$false] %s3038_s21 }
  0x75   : > { %s3040_s10 = scalar_lea.vmem %s3039_s21, 256  ;;  %p3041_p7 = scmp.lt.s32.totalorder %s3552_s18, %s3039_s21 }
  0x76   : > { %p3036_p13 = pnand %p3034_p11, %p4251_p12  ;;  %p3042_p2 = scmp.lt.s32.totalorder %s3040_s10, %s3033_s15 }
  0x78   : > { %p3037_p1 = pneg %p3036_p13  ;;  %p3043_p3 = por %p3042_p2, %p3041_p7 }
  0x7a   : > { %p3044_p6 = pnand %p3043_p3, %p3037_p1 }
  0x7c   : > { %3047 = shalt.err (!%p3044_p6)
}
  0x7d   : > { %s4290_s12 = smov 4   ;;  %s4291_s27 = smov 64  }
  0x7e   : > { %2802 = dma.hbm_to_vmem [thread:$0]  (!%p3547_p10), %s3542_s11, 128, %s3552_s18, %s3556_s16, %s4291_s27, %s4291_s27, %s4290_s12  }
  0x7f   : > { %s4292_s28 = sshll.u32 %s3300_s30, 7  ;;  %s481_s21 = scalar_lea.vmem [#allocation11], %s3534_s7 }
  0x80   : > { %s3592_s15 = scalar_lea.hbm %s4217_s2, %s4292_s28  ;;  %s490_s10 = sshll.u32 %s481_s21, 4  ;;  %s3613_s10 = int_to_ptr.vmem [resolvable:$true] %s490_s10 }
  0x81   : > { %s3311_s1 = smov [#allocation17]   ;;  %s4293_s9 = sld [smem:[#allocation45_spill]] }
  0x82   : > { %s417_s4 = sshll.u32 %s3311_s1, 4  ;;  %s418_s4 = int_to_ptr.vmem [resolvable:$true] %s417_s4 }
  0x87   : > { %s3048_s3 = scalar_lea.hbm %s4293_s9, 16 }
  0x88   : > { %p3049_p7 = scmp.ne.s32.totalorder %s4293_s9, %s3048_s3  ;;  %p3055_p0 = scmp.lt.u32.totalorder %s3048_s3, %s4293_s9 }
  0x8a   : > { %p3051_p1 = pnand %p3049_p7, %p3481_p9 }
  0x8c   : > { %p3052_p5 = pneg %p3051_p1 }
  0x8e   : > { %p3057_p4 = pnand %p3055_p0, %p3052_p5 }
  0x90   : > { %3060 = shalt.err (!%p3057_p4)
}
  0x91   : > { %s3061_s7 = scalar_lea.vmem %s418_s4, 16  ;;  %s3068_s1 = scalar_lea.vmem %s418_s4, 32 }
  0x92   : > { %p3062_p8 = scmp.ne.s32.totalorder %s418_s4, %s3061_s7  ;;  %p3069_p2 = scmp.lt.s32.totalorder %s418_s4, %s418_s4 }
  0x93   : > { %p3070_p3 = scmp.lt.s32.totalorder %s3068_s1, %s3061_s7 }
  0x94   : > { %p3064_p11 = pnand %p3062_p8, %p3481_p9 }
  0x95   : > { %p3071_p6 = por %p3070_p3, %p3069_p2 }
  0x96   : > { %p3065_p13 = pneg %p3064_p11 }
  0x98   : > { %p3072_p12 = pnand %p3071_p6, %p3065_p13 }
  0x9a   : > { %3075 = shalt.err (!%p3072_p12)
}
  0x9b   : > { %p4294_p7 = scmp.ne.s32.totalorder %s4283_s19, 0  ;;  %s2584_s3 = sadd.s32 4294967294, %s3304_s13  }
  0x9c   : > { %s50_s22 = sadd.s32 1, %s3296_s29  ;;  %s54_s19 = sadd.s32 1, %s3300_s30 }
  0x9d   : > { %2795 = dma.hbm_to_vmem [thread:$0]  (!%p4294_p7), %s4293_s9, 16, %s418_s4, [#allocation16]  }
  0x9e   : > { %p52_p9 = scmp.ge.s32.totalorder %s50_s22, 2  ;;  %s63_s17 = sadd.s32 1, %s3284_s26 }
  0x9f   : > { %p76_p12 = scmp.ne.s32.totalorder %s3280_s25, %s3276_s24  ;;  %p70_p1 = scmp.ne.s32.totalorder %s3284_s26, %s3280_s25 }
  0xa0   : > { %s4354_s22 = smov (%p52_p9, %s50_s22), 0  ;;  %s4356_s19 = smov (!%p52_p9, %s54_s19), %s3300_s30 }
  0xa1   : > { %4295 = sst [smem:[#allocation33_spill]] %s4354_s22  ;;  %s59_s5 = ssub.s32 %s3296_s29, %s4354_s22 }
  0xa2   : > { %p56_p5 = scmp.ge.s32.totalorder %s4356_s19, 2  ;;  %p4296_p0 = scmp.eq.s32.totalorder %s3447_s14, 0 }
  0xa3   : > { %p356_p8 = scmp.eq.s32.totalorder %s3447_s14, 3  ;;  %p362_p11 = scmp.eq.s32.totalorder %s2584_s3, 3 }
  0xa4   : > { %p3630_p4 = por %p4296_p0, %p76_p12  ;;  %s4358_s19 = smov (%p56_p5, %s4356_s19), 0 }
  0xa5   : > { %4298 = sst [smem:[#allocation34_spill]] %s4358_s19  ;;  %p3637_p13 = por %p356_p8, %p70_p1 }
  0xa6   : > { %s4297_s4 = scalar_select %p3630_p4, 1, 0 }
  0xa7   : > { %s4299_s6 = scalar_select %p3637_p13, 1, 0 }
  0xa8   : > { %p3641_p2 = por %p362_p11, %p76_p12  ;;  %s58_s20 = ssub.s32 %s3300_s30, %s4358_s19 }
  0xa9   : > { %4300 = sst [smem:[#allocation35_spill]] %s4299_s6  ;;  %p4303_p3 = scmp.eq.s32.totalorder %s3304_s13, 0 }
  0xaa   : > { %s4301_s28 = scalar_select %p3641_p2, 1, 0 }
  0xab   : > { %p3649_p6 = por %p4303_p3, %p70_p1  ;;  %s60_s11 = sor.u32 %s59_s5, %s58_s20 }
  0xac   : > { %4302 = sst [smem:[#allocation36_spill]] %s4301_s28  ;;  %p89_p7 = scmp.eq.s32.totalorder %s58_s20, 0 }
  0xad   : > { %p61_p9 = scmp.eq.s32.totalorder %s60_s11, 0  ;;  %s3654_s7 = sand.u32 1, %s3284_s26  }
  0xae   : > { %s4306_s1 = sadd.s32 1, %s3272_s23  ;;  %s2590_s3 = sshll.u32 %s3654_s7, 2 }
  0xaf   : > { %s3659_s0 = scalar_select %p89_p7, %s3272_s23, %s4306_s1  }
  0xb0   : > { %s3662_s8 = scalar_select %p61_p9, %s3284_s26, %s63_s17  }
  0xb1   : > { %s2591_s9 = sshll.u32 %s3300_s30, 1  ;;  %s438_s22 = scalar_lea.vmem [#allocation6], %s2590_s3 }
  0xb2   : > { %s3667_s19 = sadd.s32 %s3296_s29, %s2591_s9  ;;  %s447_s20 = sshll.u32 %s438_s22, 4  ;;  %s3675_s20 = int_to_ptr.vmem [resolvable:$true] %s447_s20 }
  0xb3   : > { %s2592_s5 = sshll.u32 %s3667_s19, 6  ;;  %s4307_s24 = sld [smem:[#allocation37_spill]] }
  0xb4   : > { %p4309_p12 = scmp.lt.s32.totalorder %s3304_s13, 4  ;;  %s3076_s1 = scalar_lea.hbm %s3592_s15, 128 }
  0xb5   : > { %p3077_p5 = scmp.ne.s32.totalorder %s3592_s15, %s3076_s1  ;;  %p4311_p0 = pneg %p3547_p10 }
  0xb6   : > { %p3681_p1 = pnand %p4309_p12, %p3649_p6  ;;  %s3081_s28 = scalar_lea.hbm %s4217_s2, 256 }
  0xb7   : > { %p3079_p8 = pnand %p3077_p5, %p4311_p0  ;;  %p3082_p3 = scmp.lt.u32.totalorder %s3592_s15, %s4217_s2 }
  0xb8   : > { %p3083_p7 = scmp.lt.u32.totalorder %s3081_s28, %s3076_s1  ;;  %p3085_p6 = scmp.lt.u32.totalorder %s3076_s1, %s3592_s15 }
  0xb9   : > { %s4308_s6 = smov %s4307_s24  ;;  %s3673_s14 = scalar_lea.hbm %s4307_s24, %s2592_s5 }
  0xba   : > { %p3080_p11 = pneg %p3079_p8  ;;  %p3084_p9 = por %p3083_p7, %p3082_p3 }
  0xbc   : > { %p3086_p12 = por %p3085_p6, %p3084_p9 }
  0xbe   : > { %p3087_p2 = pnand %p3086_p12, %p3080_p11 }
  0xc0   : > { %3090 = shalt.err (!%p3087_p2)
}
  0xc1   : > { %s3091_s21 = scalar_lea.vmem %s3613_s10, 128  ;;  %s3312_s5 = smov [#allocation11]  }
  0xc2   : > { %p3092_p5 = scmp.ne.s32.totalorder %s3613_s10, %s3091_s21  ;;  %s3096_s11 = sshll.u32 %s3312_s5, 4  ;;  %s3097_s11 = int_to_ptr.vmem [resolvable:$false] %s3096_s11 }
  0xc3   : > { %s3098_s9 = scalar_lea.vmem %s3097_s11, 256  ;;  %p3099_p4 = scmp.lt.s32.totalorder %s3613_s10, %s3097_s11 }
  0xc4   : > { %p3094_p8 = pnand %p3092_p5, %p4311_p0  ;;  %p3100_p3 = scmp.lt.s32.totalorder %s3098_s9, %s3091_s21 }
  0xc6   : > { %p3095_p13 = pneg %p3094_p8  ;;  %p3101_p7 = por %p3100_p3, %p3099_p4 }
  0xc8   : > { %p3102_p9 = pnand %p3101_p7, %p3095_p13 }
  0xca   : > { %3105 = shalt.err (!%p3102_p9)
}
  0xcb   : > { %2805 = dma.hbm_to_vmem [thread:$0]  (!%p3547_p10), %s3592_s15, 128, %s3613_s10, %s3556_s16, %s4291_s27, %s4291_s27, %s4290_s12  }
  0xcc   : > { %s2601_s1 = sshll.u32 %s3667_s19, 5  ;;  %s435_s22 = scalar_lea.sflag [#allocation7], %s3654_s7 }
  0xcd   : > { %s3106_s28 = scalar_lea.hbm %s3673_s14, 64  ;;  %p3108_p13 = pneg %p3681_p1 }
  0xce   : > { %p3107_p4 = scmp.ne.s32.totalorder %s3673_s14, %s3106_s28  ;;  %s3111_s3 = scalar_lea.hbm %s4308_s6, 256 }
  0xcf   : > { %p3112_p6 = scmp.lt.u32.totalorder %s3673_s14, %s4308_s6  ;;  %p3113_p12 = scmp.lt.u32.totalorder %s3111_s3, %s3106_s28 }
  0xd0   : > { %p3109_p2 = pnand %p3108_p13, %p3107_p4  ;;  %p3115_p5 = scmp.lt.u32.totalorder %s3106_s28, %s3673_s14 }
  0xd1   : > { %p3114_p10 = por %p3113_p12, %p3112_p6 }
  0xd2   : > { %p3110_p11 = pneg %p3109_p2 }
  0xd3   : > { %p3116_p0 = por %p3115_p5, %p3114_p10 }
  0xd5   : > { %p3117_p8 = pnand %p3116_p0, %p3110_p11 }
  0xd7   : > { %3120 = shalt.err (!%p3117_p8)
}
  0xd8   : > { %s3121_s16 = scalar_lea.vmem %s3675_s20, 64  ;;  %s3313_s12 = smov [#allocation6]  }
  0xd9   : > { %p3122_p3 = scmp.ne.s32.totalorder %s3675_s20, %s3121_s16  ;;  %s3126_s27 = sshll.u32 %s3313_s12, 4  ;;  %s3127_s27 = int_to_ptr.vmem [resolvable:$false] %s3126_s27 }
  0xda   : > { %s3128_s15 = scalar_lea.vmem %s3127_s27, 128  ;;  %p3129_p4 = scmp.lt.s32.totalorder %s3675_s20, %s3127_s27 }
  0xdb   : > { %p3124_p7 = pnand %p3122_p3, %p3108_p13  ;;  %p3130_p2 = scmp.lt.s32.totalorder %s3128_s15, %s3121_s16 }
  0xdd   : > { %p3125_p9 = pneg %p3124_p7  ;;  %p3131_p6 = por %p3130_p2, %p3129_p4 }
  0xdf   : > { %p3132_p12 = pnand %p3131_p6, %p3125_p9 }
  0xe1   : > { %3135 = shalt.err (!%p3132_p12)
}
  0xe2   : > { %2799 = dma.hbm_to_vmem [thread:$0]  (!%p3681_p1), %s3673_s14, 64, %s3675_s20, %s435_s22  }
  0xe3   : > { %s2599_s10 = sshll.u32 %s3654_s7, 1  ;;  %s4312_s28 = sld [smem:[#allocation39_spill]] }
  0xe4   : > { %s504_s3 = scalar_lea.vmem [#allocation12], %s2599_s10  ;;  %s4314_s5 = sand.u32 1, %s3304_s13  }
  0xe5   : > { %s514_s21 = sshll.u32 %s504_s3, 4  ;;  %s501_s16 = scalar_lea.sflag [#allocation13], %s4314_s5  ;;  %s515_s21 = int_to_ptr.vmem [resolvable:$true] %s514_s21 }
  0xe9   : > { %s4313_s18 = smov %s4312_s28  ;;  %s3745_s24 = scalar_lea.hbm %s4312_s28, %s2601_s1 }
  0xea   : > { %s3136_s12 = scalar_lea.hbm %s3745_s24, 32  ;;  %s3141_s7 = scalar_lea.hbm %s4313_s18, 128 }
  0xeb   : > { %p3137_p11 = scmp.ne.s32.totalorder %s3745_s24, %s3136_s12  ;;  %p3142_p0 = scmp.lt.u32.totalorder %s3745_s24, %s4313_s18 }
  0xec   : > { %p3143_p8 = scmp.lt.u32.totalorder %s3141_s7, %s3136_s12  ;;  %p3145_p7 = scmp.lt.u32.totalorder %s3136_s12, %s3745_s24 }
  0xed   : > { %p3139_p10 = pnand %p3137_p11, %p3108_p13 }
  0xee   : > { %p3144_p3 = por %p3143_p8, %p3142_p0 }
  0xef   : > { %p3140_p5 = pneg %p3139_p10 }
  0xf0   : > { %p3146_p9 = por %p3145_p7, %p3144_p3 }
  0xf2   : > { %p3147_p4 = pnand %p3146_p9, %p3140_p5 }
  0xf4   : > { %3150 = shalt.err (!%p3147_p4)
}
  0xf5   : > { %s3151_s22 = scalar_lea.vmem %s515_s21, 32  ;;  %s3314_s27 = smov [#allocation12]  }
  0xf6   : > { %p3152_p2 = scmp.ne.s32.totalorder %s515_s21, %s3151_s22  ;;  %s3156_s15 = sshll.u32 %s3314_s27, 4  ;;  %s3157_s15 = int_to_ptr.vmem [resolvable:$false] %s3156_s15 }
  0xf7   : > { %s3158_s10 = scalar_lea.vmem %s3157_s15, 64  ;;  %p3159_p11 = scmp.lt.s32.totalorder %s515_s21, %s3157_s15 }
  0xf8   : > { %p3154_p6 = pnand %p3152_p2, %p3108_p13  ;;  %p3160_p10 = scmp.lt.s32.totalorder %s3158_s10, %s3151_s22 }
  0xfa   : > { %p3155_p12 = pneg %p3154_p6  ;;  %p3161_p0 = por %p3160_p10, %p3159_p11 }
  0xfc   : > { %p3162_p8 = pnand %p3161_p0, %p3155_p12 }
  0xfe   : > { %3165 = shalt.err (!%p3162_p8)
}
  0xff   : > { %2808 = dma.hbm_to_vmem [thread:$0]  (!%p3681_p1), %s3745_s24, 32, %s515_s21, %s501_s16  }
 0x100   : > { %s4315_s11 = sld [smem:[#allocation31_spill]] }
 0x106   : > { %p4316_p5 = scmp.ne.s32.totalorder %s4315_s11, 0 }
 0x107   : > { %s3771_s9 = sand.u32 (!%p4316_p5), 1, %s3280_s25   ;;  %p4317_p13 = scmp.ne.s32.totalorder (!%p4316_p5), %s4297_s4, 0 }
 0x108   : > { %523 = sbr.rel (%p4316_p5) target bundleno = 1856 (0x740), region = 68  ;;  %s2603_s28 = sshll.u32 (!%p4316_p5), %s3771_s9, 2 }
 0x109   : > { %s526_s3 = scalar_lea.sflag (!%p4316_p5), [#allocation7], %s3771_s9  ;;  %s3775_s5 = scalar_lea.vmem (!%p4316_p5), [#allocation6], %s2603_s28 }
 0x10f   : > { %3239 = dma.done.wait (%p4317_p13), %s526_s3, 64  }
 0x110   : > { %3241 = vsyncadd (%p4317_p13), %s526_s3, 4294967232  ;;  %s4318_s17 = sld [smem:[#allocation29_spill]]  ;;  %s4319_s24 = sld [smem:[#allocation25_spill]] }
 0x111   : > { %s4320_s21 = sld [smem:[#allocation30_spill]] }
 0x116   : > { %s534_s16 = sand.u32 1, %s4318_s17   ;;  %s536_s12 = sand.u32 1, %s4319_s24  }
 0x117   : > { %s3783_s14 = sshll.u32 %s536_s12, 3  ;;  %s535_s19 = scalar_lea.sflag [#allocation10], %s534_s16 }
 0x118   : > { %s538_s7 = scalar_lea.vmem [#allocation9], %s3783_s14  ;;  %p4321_p1 = scmp.ne.s32.totalorder %s4320_s21, 0 }
 0x11a   : > { %3243 = dma.done.wait (%p4321_p1), %s535_s19, 256  }
 0x11b   : > { %3245 = vsyncadd (%p4321_p1), %s535_s19, 4294967040  ;;  %s2606_s20 = sshll.u32 %s3771_s9, 1  ;;  %s547_s1 = scalar_lea.vmem [#allocation11], %s3783_s14 }
 0x11c   : > { %s553_s22 = scalar_lea.sflag [#allocation13], %s534_s16  ;;  %s3792_s27 = scalar_lea.vmem [#allocation12], %s2606_s20 }
 0x11d   : > { %3247 = dma.done.wait (%p4317_p13), %s553_s22, 32  }
 0x11e   : > { %3249 = vsyncadd (%p4317_p13), %s553_s22, 4294967264  ;;  %p4322_p3 = scmp.eq.s32.totalorder %s4318_s17, 0 }
 0x120   : > { %3251 = dma.done.wait (%p4322_p3), [#allocation13], 256   ;;  %p4323_p7 = pmov %p4322_p3 }
 0x121   : > { %p4324_p9 = pmov %p4322_p3 }
 0x122   : > { %3253 = vsyncadd (%p4323_p7), [#allocation13], 4294967040 }
 0x123   : > { %3255 = dma.done.wait (%p4324_p9), [#allocation16], 272   ;;  %p4325_p4 = pmov %p4322_p3 }
 0x124   : > { %v3315_v0 = vmov 0.0   ;;  %vm3316_vm0 = vmmov 0   ;;  %v2928_v1 = vld [vmem:[#allocation14] sm:$0xff]   ;;  %s4326_s10 = sld [smem:[#allocation42_spill]]  ;;  %v2930_v3 = vld [vmem:[#allocation14 + $0x8] sm:$0xff]   ;;  %vm655_vm1 = vcmask 261120   ;;  %v714_v25 = vlaneseq }
 0x125   : > { %3257 = vsyncadd (%p4325_p4), [#allocation16], 4294967024  ;;  %2684 = vmatprep.subr.bf16.mxu0 %v3315_v0  ;;  %2692 = vmatprep.subr.bf16.mxu1 %v3315_v0  ;;  %v631_v5 = vld [vmem:[%s3775_s5] sm:$0xf]  ;;  %v2932_v6 = vld [vmem:[%s538_s7] sm:$0xff]   ;;  %s4327_s17 = sld [smem:[#allocation41_spill]] }
 0x126   : > { %2688 = vmatprep.mubr.msk.bf16.mxu0 %vm3316_vm0, %v3315_v0  ;;  %2696 = vmatprep.mubr.msk.bf16.mxu1 %vm3316_vm0, %v3315_v0  ;;  %s4328_s16 = sld [smem:[#allocation43_spill]]  ;;  %s3317_s12 = smov 104   ;;  %v2933_v20 = vld [vmem:[#allocation15] sm:$0xff]   ;;  %v2934_v21 = vld [vmem:[#allocation15 + $0x8] sm:$0xff]   ;;  %vm863_vm2 = vcmask 64512   ;;  %v715_v29 = vshrl.u32 %v714_v25, 7 }
 0x127   : > { %2685 = vmatpush3.bf16.msra.mxu0 %v2928_v1  ;;  %s3318_s19 = smov 120   ;;  %s3319_s7 = smov 112   ;;  %v2935_v22 = vld [vmem:[%s547_s1] sm:$0xff]   ;;  %864 = vst.msk [vmem:[#allocation5] sm:$0xff] %vm863_vm2, %v3315_v0  ;;  %865 = vst.msk [vmem:[#allocation5 + $0x8] sm:$0xff] %vm863_vm2, %v3315_v0  ;;  %vm849_vm3 = vcmask 60416  }
 0x128   : > { %2686 = vmatprep.subr.bf16.mxu0 %v3315_v0  ;;  %866 = vst.msk [vmem:[#allocation5 + $0x10] sm:$0xff] %vm863_vm2, %v3315_v0  ;;  %867 = vst.msk [vmem:[#allocation5 + $0x18] sm:$0xff] %vm863_vm2, %v3315_v0  ;;  %v3320_v23 = vmov 1983009808   ;;  %v3321_v26 = vmov 1934713408  }
 0x129   : > { %v712_v24 = vunpack.c.l.s4 %v3320_v23  ;;  %v744_v27 = vunpack.c.l.s4 %v3321_v26  ;;  %vm854_vm4 = vcmask 7168   ;;  %vm1811_vm6 = vcmask 130048   ;;  %s4331_s1 = sld [smem:[#allocation46_spill]]  ;;  %s3324_s4 = smov 16  }
 0x12a   : > { %v2929_v2 = vld [vmem:[%s4326_s10] sm:$0xff]   ;;  %v2931_v4 = vld [vmem:[%s4326_s10 + $0x8] sm:$0xff]   ;;  %859 = vst.msk [vmem:[#allocation4] sm:$0xff] %vm854_vm4, %v3315_v0  ;;  %860 = vst.msk [vmem:[#allocation4 + $0x8] sm:$0xff] %vm854_vm4, %v3315_v0  ;;  %s4332_s15 = sld [smem:[#allocation28_spill]]  ;;  %s3325_s11 = smov 8  }
 0x12b   : > { %2693 = vmatpush3.bf16.msra.mxu1 %v2929_v2  ;;  %2687 = vmatpush3.bf16.msra.mxu0 %v2930_v3  ;;  %v2611_v7 = vld [vmem:[%s4327_s17] ss:$0 sm:$0xff]  ;;  %v713_v28 = vunpack.c.0.s8 %v712_v24  ;;  %v745_v32 = vunpack.c.0.s8 %v744_v27  ;;  %861 = vst.msk [vmem:[#allocation4 + $0x10] sm:$0xff] %vm854_vm4, %v3315_v0  ;;  %862 = vst.msk [vmem:[#allocation4 + $0x18] sm:$0xff] %vm854_vm4, %v3315_v0  ;;  %s4333_s28 = sld [smem:[#allocation27_spill]]  ;;  %s3326_s3 = smov 24  }
 0x12c   : > { %2694 = vmatprep.subr.bf16.mxu1 %v3315_v0  ;;  %2700 = vmatprep.subr.bf16.mxu0 %v3315_v0  ;;  %v2617_v9 = vld [vmem:[%s4328_s16] ss:$0 sm:$0xff]  ;;  %vm2306_vm7 = vcmask 195584   ;;  %s2610_s5 = sshll.u32 %s3771_s9, 3 }
 0x12d   : > { %v3869_v33 = vsub.s32 %v713_v28, %v715_v29  ;;  %v3871_v40 = vsub.s32 %v745_v32, %v715_v29  ;;  %s623_s14 = scalar_lea.vmem [#allocation18], %s2610_s5 }
 0x12e   : > { %2689 = vmatmul.mubr.msk.bf16.vlgmr.msra.gmra.mrb[0].mxu0 %vm655_vm1, %v631_v5  ;;  %s2392_s20 = sshll.u32 %s623_s14, 4  ;;  %s4153_s20 = int_to_ptr.vmem [resolvable:$true] %s2392_s20 }
 0x12f   : > { %2695 = vmatpush3.bf16.msra.mxu1 %v2931_v4  ;;  %2704 = vmatprep.mubr.msk.bf16.mxu0 %vm3316_vm0, %v3315_v0 }
 0x130   : > { %2708 = vmatprep.subr.bf16.mxu1 %v3315_v0  ;;  %2701 = vmatpush3.bf16.msra.mxu0 %v2933_v20  ;;  %s2650_s17 = sshll.u32 %s4332_s15, 1  ;;  %s2377_s15 = scalar_lea.sflag [#allocation8], %s3771_s9 }
 0x131   : > { %2702 = vmatprep.subr.bf16.mxu0 %v3315_v0  ;;  %s2388_s24 = sadd.s32 %s4333_s28, %s2650_s17  ;;  %s3166_s28 = scalar_lea.vmem %s4153_s20, 128 }
 0x132   : > { %2697 = vmatmul.mubr.msk.bf16.vlgmr.msra.gmra.mrb[0].mxu1 %vm655_vm1, %v2932_v6  ;;  %p3167_p2 = scmp.ne.s32.totalorder %s4153_s20, %s3166_s28 }
 0x133   : > { %2710 = vmatprep.mubr.msk.bf16.mxu1 %vm3316_vm0, %v3315_v0 }
 0x134   : > { %2703 = vmatpush3.bf16.msra.mxu0 %v2934_v21 }
 0x135   : > { %2714 = vmatprep.subr.bf16.mxu0 %v3315_v0 }
 0x137   : > { %2705 = vmatmul.mubr.msk.bf16.vlgmr.msra.gmra.mrb[4].mxu0 %vm655_vm1, %v2935_v22 }
 0x138   : > { %2716 = vmatprep.mubr.msk.bf16.mxu0 %vm3316_vm0, %v3315_v0 }
 0x201   : > { %v693_v8 = vpop.f32.mrb[0].mxu0 }
 0x202   : > { %v694_v10 = vadd.f32 %v2611_v7, %v693_v8  ;;  %v2690_v11 = vpop.f32.mrb[1].mxu0 }
 0x203   : > { %v696_v13 = vpop.f32.mrb[2].mxu0 }
 0x204   : > { %706 = vrot.lane.b32.xlu1 %v694_v10, %s3317_s12  ;;  %700 = vrot.lane.b32.xlu0 %v694_v10, %s3318_s19  ;;  %v2691_v16 = vpop.f32.mrb[3].mxu0 }
 0x205   : > { %v936_v12 = vpop.f32.mrb[0].mxu1 }
 0x206   : > { %v2698_v14 = vpop.f32.mrb[1].mxu1  ;;  %v3835_v15 = vadd.f32 %v2617_v9, %v936_v12 }
 0x207   : > { %v939_v17 = vpop.f32.mrb[2].mxu1 }
 0x208   : > { %v2699_v18 = vpop.f32.mrb[3].mxu1  ;;  %1019 = vrot.lane.b32.xlu1 %v3835_v15, %s3318_s19  ;;  %703 = vrot.lane.b32.xlu0 %v694_v10, %s3319_s7  ;;  %v3842_v19 = vadd.f32 %v2617_v9, %v939_v17 }
 0x20c   : > { %1025 = vrot.lane.b32.xlu1 %v3835_v15, %s3319_s7  ;;  %1021 = vrot.lane.b32.xlu0 %v3842_v19, %s3318_s19 }
 0x210   : > { %1031 = vrot.lane.b32.xlu1 %v3835_v15, %s3317_s12  ;;  %1027 = vrot.lane.b32.xlu0 %v3842_v19, %s3319_s7 }
 0x214   : > { %1033 = vrot.lane.b32.xlu0 %v3842_v19, %s3317_s12 }
 0x276   : > { %v707_v30 = vpop.permute.xlu1 %706  ;;  %v701_v31 = vpop.permute.xlu0 %700 }
 0x277   : > { %v725_v34 = vcombine.low %v701_v31, %v707_v30  ;;  %v726_v35 = vcombine.high %v701_v31, %v707_v30 }
 0x279   : > { %v733_v41 = vrot.slane %v725_v34, %v3869_v33  ;;  %v740_v42 = vrot.slane %v726_v35, %v3869_v33 }
 0x27a   : > { %v1020_v36 = vpop.permute.xlu1 %1019  ;;  %v704_v37 = vpop.permute.xlu0 %703 }
 0x27b   : > { %v709_v38 = vcombine.low %v694_v10, %v704_v37  ;;  %v710_v39 = vcombine.high %v694_v10, %v704_v37 }
 0x27d   : > { %v717_v43 = vrot.slane %v709_v38, %v3869_v33  ;;  %v724_v44 = vrot.slane %v710_v39, %v3869_v33 }
 0x27e   : > { %v1026_v45 = vpop.permute.xlu1 %1025  ;;  %v3877_v50 = vpop.permute.xlu0 %1021 }
 0x27f   : > { %v741_v46 = vcombine.low %v717_v43, %v733_v41  ;;  %v742_v47 = vcombine.high %v717_v43, %v733_v41  ;;  %v757_v48 = vcombine.low %v724_v44, %v740_v42  ;;  %v758_v49 = vcombine.high %v724_v44, %v740_v42 }
 0x280   : > { %v1037_v55 = vcombine.low %v3835_v15, %v1026_v45  ;;  %v1038_v56 = vcombine.high %v3835_v15, %v1026_v45 }
 0x281   : > { %v749_v51 = vrot.slane %v741_v46, %v3871_v40  ;;  %v756_v52 = vrot.slane %v742_v47, %v3871_v40  ;;  %v765_v53 = vrot.slane %v757_v48, %v3871_v40  ;;  %v772_v54 = vrot.slane %v758_v49, %v3871_v40 }
 0x282   : > { %v1032_v57 = vpop.permute.xlu1 %1031  ;;  %v1045_v5 = vrot.slane %v1037_v55, %v3869_v33  ;;  %v1052_v6 = vrot.slane %v1038_v56, %v3869_v33  ;;  %v1028_v9 = vpop.permute.xlu0 %1027 }
 0x283   : > { %v777_v58 = vcombine.low %v749_v51, %v756_v52  ;;  %v2615_v59 = vcombine.high %v749_v51, %v756_v52  ;;  %v793_v60 = vcombine.low %v765_v53, %v772_v54  ;;  %v2616_v61 = vcombine.high %v765_v53, %v772_v54 }
 0x284   : > { %v1053_v62 = vcombine.low %v1020_v36, %v1032_v57  ;;  %v1054_v63 = vcombine.high %v1020_v36, %v1032_v57  ;;  %v1105_v31 = vcombine.low %v3842_v19, %v1028_v9  ;;  %v1106_v32 = vcombine.high %v3842_v19, %v1028_v9 }
 0x285   : > { %v784_v1 = vrot.slane %v777_v58, %v3869_v33  ;;  %v792_v2 = vrot.slane %v2615_v59, %v3869_v33  ;;  %v800_v3 = vrot.slane %v793_v60, %v3869_v33  ;;  %v808_v4 = vrot.slane %v2616_v61, %v3869_v33 }
 0x286   : > { %v1061_v7 = vrot.slane %v1053_v62, %v3869_v33  ;;  %v1068_v8 = vrot.slane %v1054_v63, %v3869_v33  ;;  %v1034_v34 = vpop.permute.xlu0 %1033  ;;  %v1113_v46 = vrot.slane %v1105_v31, %v3869_v33  ;;  %v1120_v19 = vrot.slane %v1106_v32, %v3869_v33 }
 0x287   : > { %v809_v10 = vcombine.low %v784_v1, %v792_v2  ;;  %v810_v11 = vcombine.high %v784_v1, %v792_v2  ;;  %v825_v12 = vcombine.low %v800_v3, %v808_v4  ;;  %v826_v13 = vcombine.high %v800_v3, %v808_v4 }
 0x288   : > { %v1069_v14 = vcombine.low %v1045_v5, %v1061_v7  ;;  %v1070_v15 = vcombine.high %v1045_v5, %v1061_v7  ;;  %v1085_v16 = vcombine.low %v1052_v6, %v1068_v8  ;;  %v1086_v17 = vcombine.high %v1052_v6, %v1068_v8 }
 0x289   : > { %v817_v18 = vrot.slane %v809_v10, %v3871_v40  ;;  %v824_v20 = vrot.slane %v810_v11, %v3871_v40  ;;  %v833_v21 = vrot.slane %v825_v12, %v3871_v40  ;;  %v840_v22 = vrot.slane %v826_v13, %v3871_v40 }
 0x28a   : > { %v1077_v23 = vrot.slane %v1069_v14, %v3871_v40  ;;  %v1084_v24 = vrot.slane %v1070_v15, %v3871_v40  ;;  %v1093_v25 = vrot.slane %v1085_v16, %v3871_v40  ;;  %v1100_v26 = vrot.slane %v1086_v17, %v3871_v40 }
 0x28b   : > { %v841_v27 = vcombine.low %v817_v18, %v833_v21  ;;  %v842_v28 = vcombine.high %v817_v18, %v833_v21  ;;  %v843_v29 = vcombine.low %v824_v20, %v840_v22  ;;  %v844_v30 = vcombine.high %v824_v20, %v840_v22 }
 0x28c   : > { %v1173_v39 = vcombine.low %v1077_v23, %v1084_v24  ;;  %v2627_v41 = vcombine.high %v1077_v23, %v1084_v24  ;;  %v1189_v42 = vcombine.low %v1093_v25, %v1100_v26  ;;  %v2628_v43 = vcombine.high %v1093_v25, %v1100_v26 }
 0x28d   : > { %v845_v35 = vpack.c.bf16 %v841_v27, %v841_v27  ;;  %v846_v36 = vpack.c.bf16 %v842_v28, %v842_v28  ;;  %v847_v37 = vpack.c.bf16 %v843_v29, %v843_v29  ;;  %v848_v38 = vpack.c.bf16 %v844_v30, %v844_v30 }
 0x28e   : > { %v1121_v44 = vcombine.low %v3877_v50, %v1034_v34  ;;  %v1122_v45 = vcombine.high %v3877_v50, %v1034_v34  ;;  %v1180_v49 = vrot.slane %v1173_v39, %v3869_v33  ;;  %v1188_v51 = vrot.slane %v2627_v41, %v3869_v33 }
 0x28f   : > { %850 = vst.msk [vmem:[#allocation2] sm:$0xf] %vm849_vm3, %v845_v35  ;;  %851 = vst.msk [vmem:[#allocation2 + $0x4] sm:$0xf] %vm849_vm3, %v846_v36  ;;  %v1196_v52 = vrot.slane %v1189_v42, %v3869_v33  ;;  %v1204_v53 = vrot.slane %v2628_v43, %v3869_v33 }
 0x290   : > { %852 = vst.msk [vmem:[#allocation2 + $0x8] sm:$0xf] %vm849_vm3, %v847_v37  ;;  %853 = vst.msk [vmem:[#allocation2 + $0xc] sm:$0xf] %vm849_vm3, %v848_v38  ;;  %v1129_v47 = vrot.slane %v1121_v44, %v3869_v33  ;;  %v1136_v48 = vrot.slane %v1122_v45, %v3869_v33  ;;  %v1205_v61 = vcombine.low %v1180_v49, %v1188_v51  ;;  %v1010_v45 = vpop.f32.mrb[4].mxu0 }
 0x291   : > { %v1221_v62 = vcombine.low %v1196_v52, %v1204_v53  ;;  %v1206_v16 = vcombine.high %v1180_v49, %v1188_v51  ;;  %v1222_v17 = vcombine.high %v1196_v52, %v1204_v53  ;;  %v1798_v49 = vld [vmem:[%s3792_s27] sm:$0x3] }
 0x292   : > { %v1137_v54 = vcombine.low %v1113_v46, %v1129_v47  ;;  %v1138_v55 = vcombine.high %v1113_v46, %v1129_v47  ;;  %v1153_v56 = vcombine.low %v1120_v19, %v1136_v48  ;;  %v1154_v50 = vcombine.high %v1120_v19, %v1136_v48  ;;  %v2706_v46 = vpop.f32.mrb[5].mxu0 }
 0x293   : > { %v1213_v8 = vrot.slane %v1205_v61, %v3871_v40  ;;  %v1229_v9 = vrot.slane %v1221_v62, %v3871_v40  ;;  %v1220_v27 = vrot.slane %v1206_v16, %v3871_v40  ;;  %v1236_v28 = vrot.slane %v1222_v17, %v3871_v40  ;;  %v1013_v19 = vpop.f32.mrb[6].mxu0 }
 0x294   : > { %v1145_v57 = vrot.slane %v1137_v54, %v3871_v40  ;;  %v1152_v58 = vrot.slane %v1138_v55, %v3871_v40  ;;  %v1161_v59 = vrot.slane %v1153_v56, %v3871_v40  ;;  %v1168_v60 = vrot.slane %v1154_v50, %v3871_v40  ;;  %v2707_v47 = vpop.f32.mrb[7].mxu0 }
 0x295   : > { %v1237_v18 = vcombine.low %v1213_v8, %v1229_v9  ;;  %v1238_v20 = vcombine.high %v1213_v8, %v1229_v9  ;;  %v1239_v34 = vcombine.low %v1220_v27, %v1236_v28  ;;  %v1240_v35 = vcombine.high %v1220_v27, %v1236_v28 }
 0x296   : > { %v1241_v63 = vcombine.low %v1145_v57, %v1152_v58  ;;  %v2629_v1 = vcombine.high %v1145_v57, %v1152_v58  ;;  %v1257_v2 = vcombine.low %v1161_v59, %v1168_v60  ;;  %v2630_v3 = vcombine.high %v1161_v59, %v1168_v60  ;;  %v1609_v38 = vld [vmem:[#allocation2] sm:$0xf]  ;;  %v1610_v39 = vld [vmem:[#allocation2 + $0x4] sm:$0xf] }
 0x297   : > { %v1611_v43 = vld [vmem:[#allocation2 + $0x8] sm:$0xf]  ;;  %v1612_v44 = vld [vmem:[#allocation2 + $0xc] sm:$0xf]  ;;  %v3322_v48 = vmov -inf   ;;  %v1799_v51 = vunpack.c.0.s8 %v1798_v49 }
 0x298   : > { %v1248_v4 = vrot.slane %v1241_v63, %v3869_v33  ;;  %v1256_v5 = vrot.slane %v2629_v1, %v3869_v33  ;;  %v1264_v6 = vrot.slane %v1257_v2, %v3869_v33  ;;  %v1272_v7 = vrot.slane %v2630_v3, %v3869_v33  ;;  %855 = vst.msk [vmem:[#allocation3] sm:$0xff] %vm854_vm4, %v3322_v48 }
 0x299   : > { %856 = vst.msk [vmem:[#allocation3 + $0x8] sm:$0xff] %vm854_vm4, %v3322_v48  ;;  %857 = vst.msk [vmem:[#allocation3 + $0x10] sm:$0xff] %vm854_vm4, %v3322_v48  ;;  %vm3962_vm5 = vcmp.eq.s32.totalorder %v1799_v51, 0 }
 0x29a   : > { %v1273_v10 = vcombine.low %v1248_v4, %v1256_v5  ;;  %v1289_v11 = vcombine.low %v1264_v6, %v1272_v7  ;;  %v1274_v12 = vcombine.high %v1248_v4, %v1256_v5  ;;  %v1290_v13 = vcombine.high %v1264_v6, %v1272_v7  ;;  %858 = vst.msk [vmem:[#allocation3 + $0x18] sm:$0xff] %vm854_vm4, %v3322_v48 }
 0x29c   : > { %v1281_v14 = vrot.slane %v1273_v10, %v3871_v40  ;;  %v1297_v15 = vrot.slane %v1289_v11, %v3871_v40  ;;  %v1288_v23 = vrot.slane %v1274_v12, %v3871_v40  ;;  %v1304_v24 = vrot.slane %v1290_v13, %v3871_v40 }
 0x29d   : > { %v3323_v13 = vmov 0  }
 0x29e   : > { %v1305_v21 = vcombine.low %v1281_v14, %v1297_v15  ;;  %v1306_v22 = vcombine.high %v1281_v14, %v1297_v15  ;;  %v1307_v31 = vcombine.low %v1288_v23, %v1304_v24  ;;  %v1308_v32 = vcombine.high %v1288_v23, %v1304_v24  ;;  %2927 = vset.pattern.permute.xlu1 %v3323_v13  ;;  %v2622_v14 = vld [vmem:[#allocation17] ss:$0 sm:$0xff] }
 0x29f   : > { %2926 = vset.pattern.permute.xlu0 %v3323_v13  ;;  %v1011_v15 = vadd.f32 %v2622_v14, %v1010_v45  ;;  %v3991_v16 = vadd.f32 %v2622_v14, %v1013_v19  ;;  %v3999_v17 = vld [vmem:[#allocation3] sm:$0xff] }
 0x2a0   : > { %v1309_v25 = vpack.c.bf16 %v1305_v21, %v1237_v18  ;;  %v1310_v26 = vpack.c.bf16 %v1306_v22, %v1238_v20  ;;  %v1311_v36 = vpack.c.bf16 %v1307_v31, %v1239_v34  ;;  %v1312_v37 = vpack.c.bf16 %v1308_v32, %v1240_v35  ;;  %v4001_v18 = vld [vmem:[#allocation3 + $0x8] sm:$0xff] }
 0x2a1   : > { %v4021_v27 = vld [vmem:[#allocation3 + $0x18] sm:$0xff] }
 0x2a2   : > { %v1618_v29 = vsel %vm863_vm2, %v1309_v25, 0  ;;  %v1664_v30 = vsel %vm863_vm2, %v1310_v26, 0  ;;  %v1710_v41 = vsel %vm863_vm2, %v1311_v36, 0  ;;  %v1756_v42 = vsel %vm863_vm2, %v1312_v37, 0  ;;  %v4019_v26 = vld [vmem:[#allocation3 + $0x10] sm:$0xff] }
 0x2a3   : > { %2709 = vmatpush3.bf16.xpose.msra.mxu1 %v1618_v29  ;;  %2715 = vmatpush3.bf16.xpose.msra.mxu0 %v1664_v30 }
 0x2a4   : > { %2720 = vmatprep.subr.bf16.mxu1 %v3315_v0  ;;  %2726 = vmatprep.subr.bf16.mxu0 %v3315_v0 }
 0x2aa   : > { %2711 = vmatmul.mubr.msk.bf16.vlgmr.msra.gmra.mrb[4].mxu1 %vm863_vm2, %v1609_v38  ;;  %2717 = vmatmul.mubr.msk.bf16.vlgmr.msra.gmra.mrb[8].mxu0 %vm863_vm2, %v1610_v39 }
 0x2ab   : > { %2721 = vmatpush3.bf16.xpose.msra.mxu1 %v1710_v41  ;;  %2727 = vmatpush3.bf16.xpose.msra.mxu0 %v1756_v42 }
 0x2ac   : > { %2722 = vmatprep.mubr.msk.bf16.mxu1 %vm3316_vm0, %v3315_v0  ;;  %2728 = vmatprep.mubr.msk.bf16.mxu0 %vm3316_vm0, %v3315_v0 }
 0x2ad   : > { %2732 = vmatprep.subr.bf16.mxu1 %v3315_v0  ;;  %2738 = vmatprep.subr.bf16.mxu0 %v3315_v0 }
 0x2b2   : > { %2723 = vmatmul.mubr.msk.bf16.vlgmr.msra.gmra.mrb[8].mxu1 %vm863_vm2, %v1611_v43  ;;  %2729 = vmatmul.mubr.msk.bf16.vlgmr.msra.gmra.mrb[12].mxu0 %vm863_vm2, %v1612_v44 }
 0x2b3   : > { %2734 = vmatprep.mubr.msk.bf16.mxu1 %vm3316_vm0, %v3315_v0  ;;  %2740 = vmatprep.mubr.msk.bf16.mxu0 %vm3316_vm0, %v3315_v0 }
 0x37d   : > { %v1654_v53 = vpop.f32.mrb[4].mxu1  ;;  %v1700_v54 = vpop.f32.mrb[8].mxu0 }
 0x37e   : > { %v3968_v55 = vsel %vm3962_vm5, -1e+09, %v1654_v53  ;;  %v3972_v56 = vsel %vm3962_vm5, -1e+09, %v1700_v54  ;;  %v2712_v50 = vpop.f32.mrb[5].mxu1  ;;  %v2718_v57 = vpop.f32.mrb[9].mxu0 }
 0x37f   : > { %v1657_v58 = vpop.f32.mrb[6].mxu1  ;;  %v1703_v59 = vpop.f32.mrb[10].mxu0  ;;  %v1812_v60 = vsel %vm1811_vm6, %v3968_v55, -inf  ;;  %v1815_v61 = vsel %vm1811_vm6, %v3972_v56, -inf }
 0x380   : > { %1813 = vmax.xlane.f32.xlu1 %v1812_v60  ;;  %v2713_v62 = vpop.f32.mrb[7].mxu1  ;;  %1816 = vmax.xlane.f32.xlu0 %v1815_v61  ;;  %v2719_v63 = vpop.f32.mrb[11].mxu0 }
 0x385   : > { %v1746_v1 = vpop.f32.mrb[8].mxu1  ;;  %v1792_v2 = vpop.f32.mrb[12].mxu0 }
 0x386   : > { %v3980_v3 = vsel %vm3962_vm5, -1e+09, %v1746_v1  ;;  %v3984_v4 = vsel %vm3962_vm5, -1e+09, %v1792_v2  ;;  %v2724_v5 = vpop.f32.mrb[9].mxu1  ;;  %v2730_v6 = vpop.f32.mrb[13].mxu0 }
 0x387   : > { %v1749_v7 = vpop.f32.mrb[10].mxu1  ;;  %v1795_v8 = vpop.f32.mrb[14].mxu0  ;;  %v1818_v9 = vsel %vm1811_vm6, %v3980_v3, -inf  ;;  %v1821_v10 = vsel %vm1811_vm6, %v3984_v4, -inf }
 0x388   : > { %v2725_v11 = vpop.f32.mrb[11].mxu1  ;;  %1819 = vmax.xlane.f32.xlu0 %v1818_v9  ;;  %1822 = vmax.xlane.f32.xlu1 %v1821_v10  ;;  %v2731_v12 = vpop.f32.mrb[15].mxu0 }
 0x399   : > { %1315 = vrot.lane.b32.xlu1 %v1011_v15, %s3318_s19 }
 0x39d   : > { %1317 = vrot.lane.b32.xlu1 %v3991_v16, %s3318_s19  ;;  %s4335_s19 = sld [smem:[#allocation35_spill]] }
 0x3a1   : > { %1321 = vrot.lane.b32.xlu1 %v1011_v15, %s3319_s7 }
 0x3a3   : > { %p4337_p6 = scmp.ne.s32.totalorder %s4335_s19, 0 }
 0x3a5   : > { %1323 = vrot.lane.b32.xlu1 %v3991_v16, %s3319_s7  ;;  %s2651_s7 = sshll.u32 %s2388_s24, 7  ;;  %p3168_p12 = pnand %p3167_p2, %p4337_p6 }
 0x3a7   : > { %p3169_p11 = pneg %p3168_p12 }
 0x3a9   : > { %1327 = vrot.lane.b32.xlu1 %v1011_v15, %s3317_s12 }
 0x40d   : > { %v1814_v20 = vpop.xlane.xlu1 %1813  ;;  %v1817_v21 = vpop.xlane.xlu0 %1816 }
 0x40e   : > { %v4004_v22 = vmax.f32 %v3999_v17, %v1814_v20  ;;  %v4007_v23 = vmax.f32 %v4001_v18, %v1817_v21 }
 0x410   : > { %v1828_v24 = vsub.f32 %v3999_v17, %v4004_v22  ;;  %2113 = vst.msk [vmem:[#allocation3] sm:$0xff] %vm854_vm4, %v4004_v22  ;;  %v1829_v25 = vsub.f32 %v4001_v18, %v4007_v23  ;;  %2114 = vst.msk [vmem:[#allocation3 + $0x8] sm:$0xff] %vm854_vm4, %v4007_v23  ;;  %1842 = vperm.xlu0 %2926, %v4004_v22   ;;  %1847 = vperm.xlu1 %2927, %v4007_v23  }
 0x414   : > { %1329 = vrot.lane.b32.xlu1 %v3991_v16, %s3317_s12  ;;  %s4334_s12 = sld [smem:[#allocation47_spill]] }
 0x415   : > { %v1820_v28 = vpop.xlane.xlu0 %1819  ;;  %v1823_v29 = vpop.xlane.xlu1 %1822 }
 0x416   : > { %v4026_v30 = vmax.f32 %v4019_v26, %v1820_v28  ;;  %v4029_v31 = vmax.f32 %v4021_v27, %v1823_v29 }
 0x418   : > { %v1830_v32 = vsub.f32 %v4019_v26, %v4026_v30  ;;  %2115 = vst.msk [vmem:[#allocation3 + $0x10] sm:$0xff] %vm854_vm4, %v4026_v30  ;;  %v1831_v34 = vsub.f32 %v4021_v27, %v4029_v31  ;;  %2116 = vst.msk [vmem:[#allocation3 + $0x18] sm:$0xff] %vm854_vm4, %v4029_v31  ;;  %1852 = vperm.xlu1 %2927, %v4026_v30   ;;  %1857 = vperm.xlu0 %2926, %v4029_v31   ;;  %v1875_v27 = vld [vmem:[#allocation4 + $0x18] sm:$0xff]  ;;  %v1874_v31 = vld [vmem:[#allocation4 + $0x10] sm:$0xff] }
 0x419   : > { %v1316_v35 = vpop.permute.xlu1 %1315 }
 0x41a   : > { %v1836_v18 = vmul.f32 1.442695, %v1830_v32  ;;  %v1838_v26 = vmul.f32 1.442695, %v1831_v34 }
 0x41d   : > { %v1318_v36 = vpop.permute.xlu1 %1317 }
 0x421   : > { %v1322_v37 = vpop.permute.xlu1 %1321 }
 0x422   : > { %v1333_v43 = vcombine.low %v1011_v15, %v1322_v37  ;;  %v1334_v44 = vcombine.high %v1011_v15, %v1322_v37 }
 0x424   : > { %v1341_v19 = vrot.slane %v1333_v43, %v3869_v33  ;;  %v1348_v47 = vrot.slane %v1334_v44, %v3869_v33 }
 0x425   : > { %v1324_v38 = vpop.permute.xlu1 %1323 }
 0x426   : > { %v1401_v62 = vcombine.low %v3991_v16, %v1324_v38  ;;  %v1402_v63 = vcombine.high %v3991_v16, %v1324_v38 }
 0x428   : > { %v1409_v12 = vrot.slane %v1401_v62, %v3869_v33 }
 0x429   : > { %v1328_v39 = vpop.permute.xlu1 %1327 }
 0x42a   : > { %v1349_v41 = vcombine.low %v1316_v35, %v1328_v39  ;;  %v1350_v42 = vcombine.high %v1316_v35, %v1328_v39 }
 0x42c   : > { %v1357_v45 = vrot.slane %v1349_v41, %v3869_v33  ;;  %v1364_v46 = vrot.slane %v1350_v42, %v3869_v33 }
 0x42e   : > { %v1365_v48 = vcombine.low %v1341_v19, %v1357_v45  ;;  %v1366_v49 = vcombine.high %v1341_v19, %v1357_v45  ;;  %v1381_v51 = vcombine.low %v1348_v47, %v1364_v46  ;;  %v1382_v52 = vcombine.high %v1348_v47, %v1364_v46 }
 0x430   : > { %v1373_v53 = vrot.slane %v1365_v48, %v3871_v40  ;;  %v1380_v54 = vrot.slane %v1366_v49, %v3871_v40  ;;  %v1389_v50 = vrot.slane %v1381_v51, %v3871_v40  ;;  %v1396_v57 = vrot.slane %v1382_v52, %v3871_v40 }
 0x432   : > { %v1469_v5 = vcombine.low %v1373_v53, %v1380_v54  ;;  %v2631_v6 = vcombine.high %v1373_v53, %v1380_v54  ;;  %v1485_v7 = vcombine.low %v1389_v50, %v1396_v57  ;;  %v2632_v8 = vcombine.high %v1389_v50, %v1396_v57 }
 0x434   : > { %v1476_v14 = vrot.slane %v1469_v5, %v3869_v33  ;;  %v1484_v15 = vrot.slane %v2631_v6, %v3869_v33  ;;  %v1492_v16 = vrot.slane %v1485_v7, %v3869_v33  ;;  %v1500_v20 = vrot.slane %v2632_v8, %v3869_v33 }
 0x436   : > { %v1501_v19 = vcombine.low %v1476_v14, %v1484_v15  ;;  %v1517_v47 = vcombine.low %v1492_v16, %v1500_v20 }
 0x48f   : > { %v1843_v58 = vpop.permute.xlu0 %1842  ;;  %v1848_v59 = vpop.permute.xlu1 %1847 }
 0x490   : > { %v1860_v60 = vsub.f32 %v3968_v55, %v1843_v58  ;;  %v1861_v61 = vsub.f32 %v3972_v56, %v1848_v59  ;;  %v1416_v55 = vrot.slane %v1402_v63, %v3869_v33  ;;  %v1525_v63 = vrot.slane %v1517_v47, %v3871_v40 }
 0x492   : > { %v1864_v1 = vmul.f32 1.442695, %v1860_v60  ;;  %v1866_v2 = vmul.f32 1.442695, %v1861_v61  ;;  %v1509_v60 = vrot.slane %v1501_v19, %v3871_v40  ;;  %v1518_v61 = vcombine.high %v1492_v16, %v1500_v20 }
 0x493   : > { %v1330_v9 = vpop.permute.xlu1 %1329 }
 0x494   : > { %2938 = vpow2.f32 %v1864_v1  ;;  %v1417_v10 = vcombine.low %v1318_v36, %v1330_v9  ;;  %v1418_v11 = vcombine.high %v1318_v36, %v1330_v9 }
 0x495   : > { %2940 = vpow2.f32 %v1866_v2 }
 0x496   : > { %v1425_v56 = vrot.slane %v1417_v10, %v3869_v33  ;;  %v1432_v13 = vrot.slane %v1418_v11, %v3869_v33  ;;  %v1532_v10 = vrot.slane %v1518_v61, %v3871_v40 }
 0x497   : > { %v1858_v21 = vpop.permute.xlu0 %1857  ;;  %v1853_v28 = vpop.permute.xlu1 %1852 }
 0x498   : > { %v1433_v29 = vcombine.low %v1409_v12, %v1425_v56  ;;  %v1434_v35 = vcombine.high %v1409_v12, %v1425_v56  ;;  %v1449_v36 = vcombine.low %v1416_v55, %v1432_v13  ;;  %v1450_v37 = vcombine.high %v1416_v55, %v1432_v13 }
 0x499   : > { %v1863_v38 = vsub.f32 %v3984_v4, %v1858_v21  ;;  %v1862_v39 = vsub.f32 %v3980_v3, %v1853_v28  ;;  %v1502_v4 = vcombine.high %v1476_v14, %v1484_v15  ;;  %v1533_v55 = vcombine.low %v1509_v60, %v1525_v63 }
 0x49a   : > { %v1441_v41 = vrot.slane %v1433_v29, %v3871_v40  ;;  %v1448_v42 = vrot.slane %v1434_v35, %v3871_v40  ;;  %v1457_v43 = vrot.slane %v1449_v36, %v3871_v40  ;;  %v1464_v44 = vrot.slane %v1450_v37, %v3871_v40 }
 0x49b   : > { %v1870_v45 = vmul.f32 1.442695, %v1863_v38  ;;  %v1868_v46 = vmul.f32 1.442695, %v1862_v39  ;;  %v1516_v9 = vrot.slane %v1502_v4, %v3871_v40  ;;  %v1534_v13 = vcombine.high %v1509_v60, %v1525_v63 }
 0x49c   : > { %v1537_v48 = vcombine.low %v1441_v41, %v1448_v42  ;;  %v2633_v49 = vcombine.high %v1441_v41, %v1448_v42  ;;  %v1553_v51 = vcombine.low %v1457_v43, %v1464_v44  ;;  %v2634_v52 = vcombine.high %v1457_v43, %v1464_v44 }
 0x49d   : > { %2942 = vpow2.f32 %v1870_v45  ;;  %v1535_v35 = vcombine.low %v1516_v9, %v1532_v10  ;;  %v1536_v38 = vcombine.high %v1516_v9, %v1532_v10  ;;  %v1834_v43 = vmul.f32 1.442695, %v1829_v25 }
 0x49e   : > { %v2939_v53 = vpop.eup %2938  ;;  %v1544_v3 = vrot.slane %v1537_v48, %v3869_v33  ;;  %v1552_v54 = vrot.slane %v2633_v49, %v3869_v33  ;;  %v1560_v50 = vrot.slane %v1553_v51, %v3869_v33  ;;  %v1568_v57 = vrot.slane %v2634_v52, %v3869_v33 }
 0x49f   : > { %v2941_v58 = vpop.eup %2940  ;;  %2944 = vpow2.f32 %v1868_v46  ;;  %v1880_v59 = vsel %vm1811_vm6, %v2939_v53, 0.0  ;;  %v1929_v37 = vpack.c.bf16 %v2939_v53, %v2939_v53  ;;  %v1832_v25 = vmul.f32 1.442695, %v1828_v24  ;;  %v1872_v24 = vld [vmem:[#allocation4] sm:$0xff]  ;;  %v1873_v46 = vld [vmem:[#allocation4 + $0x8] sm:$0xff] }
 0x4a0   : > { %1881 = vadd.xlane.f32.xlu1 %v1880_v59  ;;  %v1883_v62 = vsel %vm1811_vm6, %v2941_v58, 0.0  ;;  %v1569_v1 = vcombine.low %v1544_v3, %v1552_v54  ;;  %v1585_v2 = vcombine.low %v1560_v50, %v1568_v57  ;;  %v1570_v5 = vcombine.high %v1544_v3, %v1552_v54 }
 0x4a1   : > { %1884 = vadd.xlane.f32.xlu0 %v1883_v62  ;;  %v1586_v6 = vcombine.high %v1560_v50, %v1568_v57  ;;  %v1930_v41 = vpack.c.bf16 %v2941_v58, %v2941_v58  ;;  %2946 = vpow2.f32 %v1834_v43 }
 0x4a2   : > { %v1577_v7 = vrot.slane %v1569_v1, %v3871_v40  ;;  %v1593_v8 = vrot.slane %v1585_v2, %v3871_v40  ;;  %v1584_v11 = vrot.slane %v1570_v5, %v3871_v40  ;;  %2948 = vpow2.f32 %v1836_v18  ;;  %v1901_v2 = vld [vmem:[#allocation5] sm:$0xff] }
 0x4a3   : > { %v1600_v12 = vrot.slane %v1586_v6, %v3871_v40  ;;  %2950 = vpow2.f32 %v1832_v25  ;;  %v1902_v6 = vld [vmem:[#allocation5 + $0x8] sm:$0xff] }
 0x4a4   : > { %v1601_v56 = vcombine.low %v1577_v7, %v1593_v8  ;;  %v1602_v14 = vcombine.high %v1577_v7, %v1593_v8  ;;  %2952 = vpow2.f32 %v1838_v26 }
 0x4a5   : > { %v1603_v20 = vcombine.low %v1584_v11, %v1600_v12  ;;  %v1604_v28 = vcombine.high %v1584_v11, %v1600_v12 }
 0x4a6   : > { %v1605_v15 = vpack.c.bf16 %v1601_v56, %v1533_v55  ;;  %v1606_v16 = vpack.c.bf16 %v1602_v14, %v1534_v13 }
 0x4a7   : > { %v2943_v21 = vpop.eup %2942  ;;  %v1607_v42 = vpack.c.bf16 %v1603_v20, %v1535_v35  ;;  %v1608_v44 = vpack.c.bf16 %v1604_v28, %v1536_v38  ;;  %v1903_v20 = vld [vmem:[#allocation5 + $0x10] sm:$0xff] }
 0x4a8   : > { %v1889_v29 = vsel %vm1811_vm6, %v2943_v21, 0.0  ;;  %2733 = vmatpush3.bf16.msra.mxu1 %v1605_v15  ;;  %2739 = vmatpush3.bf16.msra.mxu0 %v1606_v16  ;;  %v1932_v45 = vpack.c.bf16 %v2943_v21, %v2943_v21 }
 0x4a9   : > { %v2945_v36 = vpop.eup %2944  ;;  %1890 = vadd.xlane.f32.xlu1 %v1889_v29  ;;  %2744 = vmatprep.subr.bf16.mxu1 %v3315_v0  ;;  %v1904_v29 = vld [vmem:[#allocation5 + $0x18] sm:$0xff] }
 0x4aa   : > { %v1886_v39 = vsel %vm1811_vm6, %v2945_v36, 0.0  ;;  %2750 = vmatprep.subr.bf16.mxu0 %v3315_v0  ;;  %v1931_v23 = vpack.c.bf16 %v2945_v36, %v2945_v36 }
 0x4ab   : > { %1887 = vadd.xlane.f32.xlu0 %v1886_v39  ;;  %2735 = vmatmul.mubr.msk.bf16.vlgmr.msra.gmra.mrb[12].mxu1 %vm1811_vm6, %v1929_v37  ;;  %v2947_v30 = vpop.eup %2946 }
 0x4ac   : > { %2741 = vmatmul.mubr.msk.bf16.vlgmr.msra.gmra.mrb[16].mxu0 %vm1811_vm6, %v1930_v41  ;;  %2745 = vmatpush3.bf16.msra.mxu1 %v1607_v42  ;;  %v2949_v32 = vpop.eup %2948  ;;  %v1877_v47 = vmul.f32 %v2947_v30, %v1873_v46 }
 0x4ad   : > { %2751 = vmatpush3.bf16.msra.mxu0 %v1608_v44  ;;  %2746 = vmatprep.mubr.msk.bf16.mxu1 %vm3316_vm0, %v3315_v0  ;;  %v2951_v17 = vpop.eup %2950  ;;  %v1878_v53 = vmul.f32 %v2949_v32, %v1874_v31 }
 0x4ae   : > { %2752 = vmatprep.mubr.msk.bf16.mxu0 %vm3316_vm0, %v3315_v0  ;;  %2756 = vmatprep.subr.bf16.mxu1 %v3315_v0  ;;  %v2953_v22 = vpop.eup %2952  ;;  %v1876_v19 = vmul.f32 %v2951_v17, %v1872_v24 }
 0x4af   : > { %v1879_v34 = vmul.f32 %v2953_v22, %v1875_v27 }
 0x4b3   : > { %2747 = vmatmul.mubr.msk.bf16.vlgmr.msra.gmra.mrb[16].mxu1 %vm1811_vm6, %v1931_v23 }
 0x4b4   : > { %2753 = vmatmul.mubr.msk.bf16.vlgmr.msra.gmra.mrb[20].mxu0 %vm1811_vm6, %v1932_v45  ;;  %2760 = vmatprep.mubr.msk.bf16.mxu1 %vm3316_vm0, %v3315_v0 }
 0x4ba   : > { %1912 = vperm.xlu1 %2927, %v2947_v30  }
 0x4be   : > { %1917 = vperm.xlu1 %2927, %v2949_v32  }
 0x4c1   : > { %1907 = vperm.xlu0 %2926, %v2951_v17  }
 0x4c5   : > { %1922 = vperm.xlu0 %2926, %v2953_v22  }
 0x52d   : > { %v1882_v48 = vpop.xlane.xlu1 %1881 }
 0x52e   : > { %v1885_v49 = vpop.xlane.xlu0 %1884  ;;  %v1892_v51 = vadd.f32 %v1882_v48, %v1876_v19 }
 0x52f   : > { %v1893_v52 = vadd.f32 %v1885_v49, %v1877_v47 }
 0x530   : > { %1897 = vst.msk [vmem:[#allocation4] sm:$0xff] %vm854_vm4, %v1892_v51 }
 0x531   : > { %1898 = vst.msk [vmem:[#allocation4 + $0x8] sm:$0xff] %vm854_vm4, %v1893_v52 }
 0x536   : > { %v1891_v4 = vpop.xlane.xlu1 %1890 }
 0x537   : > { %v1895_v3 = vadd.f32 %v1891_v4, %v1879_v34  ;;  %v2124_v54 = vld [vmem:[#allocation4] sm:$0xff] }
 0x538   : > { %v1888_v50 = vpop.xlane.xlu0 %1887  ;;  %v2125_v57 = vld [vmem:[#allocation4 + $0x8] sm:$0xff]  ;;  %2954 = vrcp.f32 %v2124_v54 }
 0x539   : > { %v1894_v58 = vadd.f32 %v1888_v50, %v1878_v53  ;;  %1900 = vst.msk [vmem:[#allocation4 + $0x18] sm:$0xff] %vm854_vm4, %v1895_v3  ;;  %2956 = vrcp.f32 %v2125_v57  ;;  %v2936_v50 = vld [vmem:[%s4331_s1] sm:$0xff]  }
 0x53a   : > { %v1913_v7 = vpop.permute.xlu1 %1912  ;;  %2757 = vmatpush3.bf16.msra.mxu1 %v2936_v50 }
 0x53b   : > { %1899 = vst.msk [vmem:[#allocation4 + $0x10] sm:$0xff] %vm854_vm4, %v1894_v58  ;;  %v1926_v9 = vmul.f32 %v1913_v7, %v1902_v6  ;;  %2758 = vmatprep.subr.bf16.mxu1 %v3315_v0 }
 0x53e   : > { %v1918_v21 = vpop.permute.xlu1 %1917 }
 0x53f   : > { %v1927_v36 = vmul.f32 %v1918_v21, %v1903_v20 }
 0x540   : > { %v2127_v59 = vld [vmem:[#allocation4 + $0x18] sm:$0xff]  ;;  %v1908_v5 = vpop.permute.xlu0 %1907 }
 0x541   : > { %2958 = vrcp.f32 %v2127_v59  ;;  %v1925_v8 = vmul.f32 %v1908_v5, %v1901_v2  ;;  %v2937_v2 = vld [vmem:[%s4331_s1 + $0x8] sm:$0xff]  }
 0x542   : > { %v2955_v60 = vpop.eup %2954  ;;  %v2126_v61 = vld [vmem:[#allocation4 + $0x10] sm:$0xff]  ;;  %2759 = vmatpush3.bf16.msra.mxu1 %v2937_v2 }
 0x543   : > { %v2957_v62 = vpop.eup %2956  ;;  %2134 = vperm.xlu1 %2927, %v2955_v60   ;;  %2960 = vrcp.f32 %v2126_v61 }
 0x544   : > { %2139 = vperm.xlu0 %2926, %v2957_v62   ;;  %v1923_v35 = vpop.permute.xlu0 %1922 }
 0x545   : > { %v1928_v37 = vmul.f32 %v1923_v35, %v1904_v29 }
 0x54b   : > { %v2959_v63 = vpop.eup %2958 }
 0x54c   : > { %2149 = vperm.xlu0 %2926, %v2959_v63  }
 0x54d   : > { %v2961_v1 = vpop.eup %2960 }
 0x54e   : > { %2144 = vperm.xlu1 %2927, %v2961_v1  }
 0x57e   : > { %v1970_v10 = vpop.f32.mrb[12].mxu1 }
 0x57f   : > { %v2105_v11 = vadd.f32 %v1970_v10, %v1925_v8  ;;  %v2013_v12 = vpop.f32.mrb[16].mxu0  ;;  %v2736_v55 = vpop.f32.mrb[13].mxu1 }
 0x580   : > { %v2106_v56 = vadd.f32 %v2013_v12, %v1926_v9  ;;  %v2742_v13 = vpop.f32.mrb[17].mxu0  ;;  %v1973_v14 = vpop.f32.mrb[14].mxu1 }
 0x581   : > { %2109 = vst.msk [vmem:[#allocation5] sm:$0xff] %vm863_vm2, %v2105_v11  ;;  %v2016_v15 = vpop.f32.mrb[18].mxu0  ;;  %v2737_v16 = vpop.f32.mrb[15].mxu1 }
 0x582   : > { %2110 = vst.msk [vmem:[#allocation5 + $0x8] sm:$0xff] %vm863_vm2, %v2106_v56  ;;  %v2743_v28 = vpop.f32.mrb[19].mxu0 }
 0x586   : > { %v2056_v38 = vpop.f32.mrb[16].mxu1 }
 0x587   : > { %v2107_v39 = vadd.f32 %v2056_v38, %v1927_v36  ;;  %v2099_v41 = vpop.f32.mrb[20].mxu0  ;;  %v2748_v42 = vpop.f32.mrb[17].mxu1 }
 0x588   : > { %v2108_v43 = vadd.f32 %v2099_v41, %v1928_v37  ;;  %v2754_v44 = vpop.f32.mrb[21].mxu0  ;;  %v2059_v18 = vpop.f32.mrb[18].mxu1  ;;  %v2120_v19 = vld [vmem:[#allocation5] sm:$0xff]  ;;  %v2645_v42 = vld [vmem:[%s4334_s12] ss:$0 sm:$0xff] }
 0x589   : > { %2111 = vst.msk [vmem:[#allocation5 + $0x10] sm:$0xff] %vm863_vm2, %v2107_v39  ;;  %v2102_v23 = vpop.f32.mrb[22].mxu0  ;;  %v2749_v25 = vpop.f32.mrb[19].mxu1  ;;  %v2121_v32 = vld [vmem:[#allocation5 + $0x8] sm:$0xff] }
 0x58a   : > { %2112 = vst.msk [vmem:[#allocation5 + $0x18] sm:$0xff] %vm863_vm2, %v2108_v43  ;;  %v2755_v45 = vpop.f32.mrb[23].mxu0 }
 0x590   : > { %v2122_v47 = vld [vmem:[#allocation5 + $0x10] sm:$0xff] }
 0x591   : > { %v2123_v22 = vld [vmem:[#allocation5 + $0x18] sm:$0xff] }
 0x5c2   : > { %v2135_v30 = vpop.permute.xlu1 %2134 }
 0x5c3   : > { %v2140_v26 = vpop.permute.xlu0 %2139  ;;  %v2152_v49 = vmul.f32 %v2135_v30, %v2120_v19 }
 0x5c4   : > { %v2153_v24 = vmul.f32 %v2140_v26, %v2121_v32 }
 0x5cb   : > { %v2150_v17 = vpop.permute.xlu0 %2149 }
 0x5cc   : > { %v2155_v46 = vmul.f32 %v2150_v17, %v2123_v22 }
 0x5cd   : > { %v2145_v48 = vpop.permute.xlu1 %2144 }
 0x5ce   : > { %v2172_v51 = vcombine.low %v2153_v24, %v2155_v46  ;;  %v2173_v52 = vcombine.high %v2153_v24, %v2155_v46  ;;  %v2154_v27 = vmul.f32 %v2145_v48, %v2122_v47 }
 0x5d0   : > { %v2180_v31 = vrot.slane %v2172_v51, %v3869_v33  ;;  %v2187_v34 = vrot.slane %v2173_v52, %v3869_v33  ;;  %v2156_v4 = vcombine.low %v2152_v49, %v2154_v27  ;;  %v2157_v53 = vcombine.high %v2152_v49, %v2154_v27 }
 0x5d2   : > { %v2164_v3 = vrot.slane %v2156_v4, %v3869_v33  ;;  %v2171_v54 = vrot.slane %v2157_v53, %v3869_v33 }
 0x5d4   : > { %v2188_v57 = vcombine.low %v2164_v3, %v2180_v31  ;;  %v2189_v58 = vcombine.high %v2164_v3, %v2180_v31  ;;  %v2204_v59 = vcombine.low %v2171_v54, %v2187_v34  ;;  %v2205_v60 = vcombine.high %v2171_v54, %v2187_v34 }
 0x5d6   : > { %v2196_v61 = vrot.slane %v2188_v57, %v3871_v40  ;;  %v2203_v62 = vrot.slane %v2189_v58, %v3871_v40  ;;  %v2212_v63 = vrot.slane %v2204_v59, %v3871_v40  ;;  %v2219_v1 = vrot.slane %v2205_v60, %v3871_v40 }
 0x5d8   : > { %v2224_v5 = vcombine.low %v2196_v61, %v2203_v62  ;;  %v2643_v6 = vcombine.high %v2196_v61, %v2203_v62  ;;  %v2240_v7 = vcombine.low %v2212_v63, %v2219_v1  ;;  %v2644_v8 = vcombine.high %v2212_v63, %v2219_v1 }
 0x5da   : > { %v2231_v9 = vrot.slane %v2224_v5, %v3869_v33  ;;  %v2239_v10 = vrot.slane %v2643_v6, %v3869_v33  ;;  %v2247_v11 = vrot.slane %v2240_v7, %v3869_v33  ;;  %v2255_v12 = vrot.slane %v2644_v8, %v3869_v33 }
 0x5dc   : > { %v2257_v55 = vcombine.high %v2231_v9, %v2239_v10  ;;  %v2273_v56 = vcombine.high %v2247_v11, %v2255_v12  ;;  %v2256_v0 = vcombine.low %v2231_v9, %v2239_v10  ;;  %v2272_v13 = vcombine.low %v2247_v11, %v2255_v12 }
 0x5de   : > { %v2271_v14 = vrot.slane %v2257_v55, %v3871_v40  ;;  %v2287_v15 = vrot.slane %v2273_v56, %v3871_v40  ;;  %v2264_v16 = vrot.slane %v2256_v0, %v3871_v40  ;;  %v2280_v20 = vrot.slane %v2272_v13, %v3871_v40 }
 0x5e0   : > { %v2290_v21 = vcombine.low %v2271_v14, %v2287_v15  ;;  %v2289_v28 = vcombine.high %v2264_v16, %v2280_v20  ;;  %v2288_v29 = vcombine.low %v2264_v16, %v2280_v20  ;;  %v2291_v33 = vcombine.high %v2271_v14, %v2287_v15 }
 0x5e2   : > { %2297 = vrot.lane.b32.xlu0 %v2290_v21, %s3324_s4  ;;  %2293 = vrot.lane.b32.xlu1 %v2289_v28, %s3325_s11  ;;  %s4336_s4 = sld [smem:[#allocation48_spill]] }
 0x5e6   : > { %2301 = vrot.lane.b32.xlu1 %v2291_v33, %s3326_s3  ;;  %s3327_s3 = smov [#allocation18]  }
 0x5e7   : > { %s3170_s5 = sshll.u32 %s3327_s3, 4  ;;  %s3171_s5 = int_to_ptr.vmem [resolvable:$false] %s3170_s5 }
 0x5e8   : > { %s4151_s11 = scalar_lea.hbm %s4336_s4, %s2651_s7  ;;  %s3172_s17 = scalar_lea.vmem %s3171_s5, 256 }
 0x5e9   : > { %p3173_p10 = scmp.lt.s32.totalorder %s4153_s20, %s3171_s5  ;;  %p3174_p0 = scmp.lt.s32.totalorder %s3172_s17, %s3166_s28 }
 0x5eb   : > { %p3175_p8 = por %p3174_p0, %p3173_p10 }
 0x5ed   : > { %p3176_p5 = pnand %p3175_p8, %p3169_p11 }
 0x654   : > { %v2294_v35 = vpop.permute.xlu1 %2293  ;;  %v2298_v36 = vpop.permute.xlu0 %2297 }
 0x655   : > { %v2304_v37 = vsel %vm863_vm2, %v2288_v29, %v2294_v35 }
 0x656   : > { %v2305_v40 = vsel %vm1811_vm6, %v2304_v37, %v2298_v36 }
 0x658   : > { %v2302_v38 = vpop.permute.xlu1 %2301 }
 0x659   : > { %v2307_v39 = vsel %vm2306_vm7, %v2305_v40, %v2302_v38 }
 0x65a   : > { %v2308_v41 = vpack.c.bf16 %v2307_v39, %v2307_v39 }
 0x65c   : > { %2761 = vmatmul.mubr.msk.bf16.vlgmr.msra.gmra.mrb[20].mxu1 %vm655_vm1, %v2308_v41 }
 0x72f   : > { %v2369_v43 = vpop.f32.mrb[20].mxu1 }
 0x730   : > { %v2370_v44 = vadd.f32 %v2645_v42, %v2369_v43  ;;  %v2762_v18 = vpop.f32.mrb[21].mxu1 }
 0x731   : > { %v2372_v23 = vpop.f32.mrb[22].mxu1 }
 0x732   : > { %v2763_v25 = vpop.f32.mrb[23].mxu1  ;;  %2375 = vst.msk [vmem:[%s623_s14] sm:$0xff] %vm655_vm1, %v2370_v44 }
 0x733   : > { %3179 = shalt.err (!%p3176_p5)
}
 0x734   : > { %s3180_s9 = scalar_lea.hbm %s4151_s11, 128  ;;  %s3184_s16 = scalar_lea.hbm %s4336_s4, 512 }
 0x735   : > { %p3181_p13 = scmp.ne.s32.totalorder %s4151_s11, %s3180_s9  ;;  %p3185_p7 = scmp.lt.u32.totalorder %s4151_s11, %s4336_s4 }
 0x736   : > { %p3186_p9 = scmp.lt.u32.totalorder %s3184_s16, %s3180_s9  ;;  %p3188_p2 = scmp.lt.u32.totalorder %s3180_s9, %s4151_s11 }
 0x737   : > { %p3182_p1 = pnand %p3181_p13, %p4337_p6 }
 0x738   : > { %p3187_p4 = por %p3186_p9, %p3185_p7 }
 0x739   : > { %p3183_p3 = pneg %p3182_p1 }
 0x73a   : > { %p3189_p12 = por %p3188_p2, %p3187_p4 }
 0x73c   : > { %p3190_p11 = pnand %p3189_p12, %p3183_p3 }
 0x73e   : > { %3193 = shalt.err (!%p3190_p11)
}
 0x73f   : > { %2784 = dma.vmem_to_hbm [thread:$0]  (%p4337_p6), %s4153_s20, 128, %s4151_s11, %s2377_s15  }
 0x740 PF: > { %s4338_s14 = sld [smem:[#allocation26_spill]]  ;;  %p2820_p10 = scmp.ge.s32.totalorder %s3304_s13, 2 }
 0x741   : > { %s4339_s22 = sld [smem:[#allocation36_spill]] }
 0x746   : > { %s2404_s27 = sand.u32 1, %s4338_s14  }
 0x747   : > { %p4340_p0 = scmp.ne.s32.totalorder %s4339_s22, 0  ;;  %s2405_s28 = scalar_lea.sflag [#allocation8], %s2404_s27 }
 0x749   : > { %p2810_p8 = pnand %p2820_p10, %p4340_p0 }
 0x74b   : > { %3259 = dma.done.wait (!%p2810_p8), %s2405_s28, 128  }
 0x74c   : > { %3261 = vsyncadd (!%p2810_p8), %s2405_s28, 4294967168  ;;  %s35_s13 = sadd.s32 1, %s3304_s13   ;;  %s4341_s21 = sld [smem:[#allocation25_spill]] }
 0x74d   : > { %p32_p5 = scmp.ge.s32.totalorder %s35_s13, 6   ;;  %s4342_s19 = sld [smem:[#allocation33_spill]] }
 0x74e   : > { %s4343_s20 = sld [smem:[#allocation34_spill]]  ;;  %s4344_s22 = smov %s3272_s23 }
 0x74f   : > { %s4345_s23 = smov %s3659_s0  ;;  %s4346_s24 = smov %s3280_s25 }
 0x750   : > { %s4347_s25 = smov %s3284_s26  ;;  %s4348_s26 = smov %s3662_s8 }
 0x751   : > { %s4349_s27 = smov %s3296_s29  ;;  %s4350_s28 = smov %s3300_s30 }
 0x752   :  { %34 = sbr.rel (!%p32_p5) target bundleno = 27 (0x1b), region = 170 }
 0x753   : > { %s4351_s29 = smov %s4342_s19 }
 0x754   : > { %s4352_s30 = smov %s4343_s20 }
 0x759   :  { %2410 = vsyncpa [#allocation7], 1 }
 0x75a   :  { %2412 = vsyncpa [#allocation7 + $0x1], 1 }
 0x75b   :  { %2413 = vsyncpa [#allocation10], 1 }
 0x75c   :  { %2415 = vsyncpa [#allocation10 + $0x1], 1 }
 0x75d   :  { %2416 = vsyncpa [#allocation13], 1 }
 0x75e   :  { %2418 = vsyncpa [#allocation13 + $0x1], 1 }
 0x75f   :  { %2419 = vsyncpa [#allocation16], 1 }
 0x760   :  { %2420 = vsyncpa [#allocation8], 1 }
 0x761   :  { %2422 = vsyncpa [#allocation8 + $0x1], 1 }

</bundles_post_ra>
